<compile_context>
chip_gen: v7x
topology: tpu7x:2x2x1
jax: 0.10.0
libtpu: 0.0.40
codegen_flags: <defaults>
</compile_context>

<pallas_src>
import jax
import jax.numpy as jnp
from jax.experimental import pallas as pl
from jax.experimental.pallas import tpu as pltpu

EPS = 1e-5  # PyTorch InstanceNorm2d default


# --------------------------------------------------------------------------
# Kernel
# --------------------------------------------------------------------------
def _make_kernel(NB, H, W, C):
    HW = H * W
    WC = W * C

    def tile_c(v_nc):
        # (NB, C) per-channel value -> (NB, 1, W*C), matching the activation
        # lane layout l = w*C + c.
        return jnp.broadcast_to(v_nc[:, None, :], (NB, W, C)).reshape(
            NB, WC)[:, None, :]

    def kernel(x_ref, wb1_ref, wb2_ref, aff_ref, out_ref, pad_ref):
        # Only the two H-padding rows need zeroing: W padding is folded into
        # the banded weights, and the interior rows are fully overwritten
        # every step (no full-buffer zero fill).
        zrow = jnp.zeros((NB, 1, WC), jnp.float32)
        pad_ref[:, pl.ds(0, 1), :] = zrow
        pad_ref[:, pl.ds(H + 1, 1), :] = zrow

        def conv3x3(wb_ref):
            # 3x3 conv = 3 accumulated MXU matmuls (one per kernel row kh).
            # LHS: contiguous lane-dense row slab of the padded scratch.
            # RHS: banded (W*C, W*C) matrix encoding the conv along W
            #      (3 kw taps + zero padding), precomputed in the wrapper.
            acc = None
            for kh in range(3):
                lhs = pad_ref[:, pl.ds(kh, H), :].reshape(NB * H, WC)
                part = jnp.dot(lhs, wb_ref[kh],
                               preferred_element_type=jnp.float32)
                acc = part if acc is None else acc + part
            return acc.reshape(NB, H, WC)

        def instance_norm(a, scale_row, shift_row):
            # a: (NB, H, W*C).  Two-pass per-(image, channel) statistics over
            # H*W (numerically safer than the E[x^2]-E[x]^2 form).
            s_c = jnp.sum(jnp.sum(a, axis=1).reshape(NB, W, C), axis=1)
            d = a - tile_c(s_c * (1.0 / HW))
            v_c = jnp.sum(jnp.sum(d * d, axis=1).reshape(NB, W, C), axis=1)
            rstd = tile_c(jax.lax.rsqrt(v_c * (1.0 / HW) + EPS))
            return d * rstd * scale_row + shift_row

        aff = aff_ref[...]                              # (4, W*C), pre-tiled
        g1_row = aff[0:1, :].reshape(1, 1, WC)
        be1_row = aff[1:2, :].reshape(1, 1, WC)
        g2_row = aff[2:3, :].reshape(1, 1, WC)
        be2_row = aff[3:4, :].reshape(1, 1, WC)

        # ---- conv1 -> InstanceNorm -> ReLU  (conv bias dropped: it is
        # exactly cancelled by InstanceNorm's mean subtraction)
        pad_ref[:, pl.ds(1, H), :] = x_ref[...]
        h = jnp.maximum(instance_norm(conv3x3(wb1_ref), g1_row, be1_row), 0.0)

        # ---- conv2 -> InstanceNorm  (reuse the padded scratch; its two zero
        # rows are untouched because only the interior rows were overwritten)
        pad_ref[:, pl.ds(1, H), :] = h
        h = instance_norm(conv3x3(wb2_ref), g2_row, be2_row)

        # ---- residual add straight from the lane-dense input block
        out_ref[...] = x_ref[...] + h

    return kernel


# --------------------------------------------------------------------------
# Wrapper helpers
# --------------------------------------------------------------------------
def _banded_weights(w_hwio, W):
    """HWIO (3,3,C,C) conv weights -> (3, W*C, W*C) f32 banded matrices.

    band[kh][(w + kw - 1)*C + ci, w*C + co] = w[kh, kw, ci, co]; entries whose
    input column w + kw - 1 falls outside [0, W) are simply absent, which
    implements the SAME / zero padding along W.
    """
    C = w_hwio.shape[2]
    bands = []
    for kh in range(3):
        m = jnp.zeros((W * C, W * C), jnp.float32)
        for kw in range(3):
            shift = jnp.eye(W, W, k=1 - kw, dtype=jnp.float32)  # [w+kw-1, w]
            m = m + jnp.kron(shift, w_hwio[kh, kw].astype(jnp.float32))
        bands.append(m)
    return jnp.stack(bands)


def _ceil_to(v, m):
    return ((v + m - 1) // m) * m


def _vmem_budgets():
    """(budget for our accounted buffers, vmem_limit_bytes for the compiler).

    v5e/v6e: 128 MiB VMEM -> generous budget so NB (matmul M) grows and the
    ~0.35us/step grid overhead is amortized.  v7x: 64 MiB per TensorCore ->
    conservative, leaving headroom for compiler temporaries.
    """
    try:
        cap = pltpu.get_tpu_info().vmem_capacity_bytes
    except Exception:
        cap = 64 << 20
    if cap >= (96 << 20):          # v5e / v6e
        return 48 << 20, 64 << 20
    return 20 << 20, 32 << 20      # v7x (and conservative fallback)


def _pick_block_batch(N, H, W, C, budget_bytes):
    """Largest NB dividing N (and <= N//2 when N >= 2 so the 'parallel' batch
    axis has >= 2 grid steps for v7x's two TensorCores) whose real,
    (8,128)-padded f32 VMEM footprint fits the budget."""
    lanes = _ceil_to(W * C, 128)
    act = _ceil_to(H, 8) * lanes * 4          # one (H, W*C) activation slab
    pad = _ceil_to(H + 2, 8) * lanes * 4      # padded scratch slab
    # per image: double-buffered in + out blocks (4 slabs), padded scratch,
    # ~4 live activation-sized temporaries (conv acc, h, (x-mean) diff, ...).
    per_img = 4 * act + pad + 4 * act
    # fixed: two double-buffered (3, W*C, W*C) banded weights + (4, W*C) affine
    fixed = 2 * 2 * 3 * _ceil_to(W * C, 8) * lanes * 4 + 2 * 8 * lanes * 4
    avail = max(budget_bytes - fixed, per_img)
    nb_cap = max(1, min(N, avail // per_img))
    if N >= 2:
        nb_cap = min(nb_cap, max(1, N // 2))
    nb = 1
    for cand in range(1, int(nb_cap) + 1):
        if N % cand == 0:
            nb = cand
    return nb


# --------------------------------------------------------------------------
# Public wrapper
# --------------------------------------------------------------------------
def residual_block(x_nchw, params):
    """x_nchw: (N, C, H, W) float32. Returns (N, C, H, W)."""
    # Conv biases (_b1, _b2) are intentionally unused: a per-channel bias
    # immediately followed by InstanceNorm's mean subtraction is a no-op.
    w1, _b1, g1, be1, w2, _b2, g2, be2 = params
    N, C, H, W = x_nchw.shape
    WC = W * C

    # NHWC, then fold W into the lane dimension -> (N, H, W*C) lane-dense.
    x = jnp.transpose(x_nchw, (0, 2, 3, 1)).astype(jnp.float32).reshape(N, H, WC)

    wb1 = _banded_weights(w1, W)               # (3, W*C, W*C)
    wb2 = _banded_weights(w2, W)
    # Per-channel affine params pre-tiled to the lane layout l = w*C + c and
    # packed into a single lane-dense (4, W*C) input (one tiny DMA per step).
    aff = jnp.stack([jnp.tile(g1.reshape(C), W),
                     jnp.tile(be1.reshape(C), W),
                     jnp.tile(g2.reshape(C), W),
                     jnp.tile(be2.reshape(C), W)]).astype(jnp.float32)

    budget, vmem_limit = _vmem_budgets()
    NB = _pick_block_batch(N, H, W, C, budget)
    grid = (N // NB,)

    img_spec = pl.BlockSpec((NB, H, WC), lambda n: (n, 0, 0))
    wb_spec = pl.BlockSpec((3, WC, WC), lambda n: (0, 0, 0))
    aff_spec = pl.BlockSpec((4, WC), lambda n: (0, 0))

    out = pl.pallas_call(
        _make_kernel(NB, H, W, C),
        out_shape=jax.ShapeDtypeStruct((N, H, WC), jnp.float32),
        grid=grid,
        in_specs=[img_spec, wb_spec, wb_spec, aff_spec],
        out_specs=img_spec,
        scratch_shapes=[pltpu.VMEM((NB, H + 2, WC), jnp.float32)],
        compiler_params=pltpu.CompilerParams(
            dimension_semantics=("parallel",),   # shard batch over 2 TCs (v7x)
            vmem_limit_bytes=vmem_limit),
    )(x, wb1, wb2, aff)

    return jnp.transpose(out.reshape(N, H, W, C), (0, 3, 1, 2))


# --------------------------------------------------------------------------
# Pure-JAX reference matching PyTorch semantics (conv WITH bias) — also
# validates that dropping the bias inside the kernel is a true no-op.
# --------------------------------------------------------------------------
def reference(x_nchw, params):
    w1, b1, g1, be1, w2, b2, g2, be2 = params
    x = jnp.transpose(x_nchw, (0, 2, 3, 1))

    def conv(h, w, b):
        y = jax.lax.conv_general_dilated(
            h, w, (1, 1), 'SAME', dimension_numbers=('NHWC', 'HWIO', 'NHWC'))
        return y + b.reshape(1, 1, 1, -1)

    def inorm(h, g, be):
        mean = jnp.mean(h, axis=(1, 2), keepdims=True)
        var = jnp.mean((h - mean) ** 2, axis=(1, 2), keepdims=True)
        return ((h - mean) * jax.lax.rsqrt(var + EPS)
                * g.reshape(1, 1, 1, -1) + be.reshape(1, 1, 1, -1))

    h = jnp.maximum(inorm(conv(x, w1, b1), g1, be1), 0.0)
    h = inorm(conv(h, w2, b2), g2, be2)
    return jnp.transpose(x + h, (0, 3, 1, 2))


if __name__ == "__main__":
    N, C, H, W = 2, 4, 16, 16
    key = jax.random.PRNGKey(0)
    ks = jax.random.split(key, 10)

    x = jax.random.normal(ks[0], (N, C, H, W), jnp.float32)
    # Deterministic synthetic parameters (HWIO conv weights, (1,C) vectors).
    w1 = 0.1 * jax.random.normal(ks[1], (3, 3, C, C), jnp.float32)
    b1 = 0.1 * jax.random.normal(ks[2], (1, C), jnp.float32)
    g1 = 1.0 + 0.1 * jax.random.normal(ks[3], (1, C), jnp.float32)
    be1 = 0.1 * jax.random.normal(ks[4], (1, C), jnp.float32)
    w2 = 0.1 * jax.random.normal(ks[5], (3, 3, C, C), jnp.float32)
    b2 = 0.1 * jax.random.normal(ks[6], (1, C), jnp.float32)
    g2 = 1.0 + 0.1 * jax.random.normal(ks[7], (1, C), jnp.float32)
    be2 = 0.1 * jax.random.normal(ks[8], (1, C), jnp.float32)
    params = (w1, b1, g1, be1, w2, b2, g2, be2)

    out = jax.block_until_ready(residual_block(x, params))
    ref = jax.block_until_ready(reference(x, params))
    assert out.shape == (N, C, H, W)
    err = float(jnp.max(jnp.abs(out - ref)))
    assert err < 1e-4, f"max abs error {err}"
    print("KERNEL_OK")
</pallas_src>

<mosaic_0001>
module attributes {stable_mosaic.version = 11 : i64} {
  func.func @kernel(%arg0: i32, %arg1: memref<1x16x64xf32, #tpu.memory_space<vmem>>, %arg2: memref<3x64x64xf32, #tpu.memory_space<vmem>>, %arg3: memref<3x64x64xf32, #tpu.memory_space<vmem>>, %arg4: memref<4x64xf32, #tpu.memory_space<vmem>>, %arg5: memref<1x16x64xf32, #tpu.memory_space<vmem>>, %arg6: memref<1x18x64xf32, #tpu.memory_space<vmem>>) attributes {dimension_semantics = [#tpu.dimension_semantics<parallel>], iteration_bounds = array<i64: 2>, scalar_prefetch = 0 : i64, scratch_operands = 1 : i64, tpu.core_type = #tpu.core_type<tc>, window_params = [{transform_indices = @transform_0, window_bounds = array<i64: 1, 16, 64>}, {pipeline_mode = #tpu.pipeline_mode<synchronous>, transform_indices = @transform_1, window_bounds = array<i64: 3, 64, 64>}, {pipeline_mode = #tpu.pipeline_mode<synchronous>, transform_indices = @transform_2, window_bounds = array<i64: 3, 64, 64>}, {pipeline_mode = #tpu.pipeline_mode<synchronous>, transform_indices = @transform_3, window_bounds = array<i64: 4, 64>}, {transform_indices = @transform_4, window_bounds = array<i64: 1, 16, 64>}]} {
    %cst = arith.constant 0.000000e+00 : f32
    %0 = vector.broadcast %cst : f32 to vector<1x1x64xf32>
    %c0 = arith.constant 0 : index
    %c0_0 = arith.constant 0 : index
    %c0_1 = arith.constant 0 : index
    %1 = vector.load %arg6[%c0, %c0_0, %c0_1] : memref<1x18x64xf32, #tpu.memory_space<vmem>>, vector<1x1x64xf32>
    tpu.vector_store %arg6[%c0, %c0_0, %c0_1], %0 {strides = array<i32>} : memref<1x18x64xf32, #tpu.memory_space<vmem>>, vector<1x1x64xf32>,
    %c0_2 = arith.constant 0 : index
    %c17 = arith.constant 17 : index
    %c0_3 = arith.constant 0 : index
    %2 = vector.load %arg6[%c0_2, %c17, %c0_3] : memref<1x18x64xf32, #tpu.memory_space<vmem>>, vector<1x1x64xf32>
    tpu.vector_store %arg6[%c0_2, %c17, %c0_3], %0 {strides = array<i32>} : memref<1x18x64xf32, #tpu.memory_space<vmem>>, vector<1x1x64xf32>,
    %c0_4 = arith.constant 0 : index
    %c0_5 = arith.constant 0 : index
    %3 = vector.load %arg4[%c0_4, %c0_5] : memref<4x64xf32, #tpu.memory_space<vmem>>, vector<4x64xf32>
    %4 = vector.extract_strided_slice %3 {offsets = [0, 0], sizes = [1, 64], strides = [1, 1]} : vector<4x64xf32> to vector<1x64xf32>
    %5 = vector.shape_cast %4 : vector<1x64xf32> to vector<1x1x64xf32>
    %6 = vector.extract_strided_slice %3 {offsets = [1, 0], sizes = [1, 64], strides = [1, 1]} : vector<4x64xf32> to vector<1x64xf32>
    %7 = vector.shape_cast %6 : vector<1x64xf32> to vector<1x1x64xf32>
    %8 = vector.extract_strided_slice %3 {offsets = [2, 0], sizes = [1, 64], strides = [1, 1]} : vector<4x64xf32> to vector<1x64xf32>
    %9 = vector.shape_cast %8 : vector<1x64xf32> to vector<1x1x64xf32>
    %10 = vector.extract_strided_slice %3 {offsets = [3, 0], sizes = [1, 64], strides = [1, 1]} : vector<4x64xf32> to vector<1x64xf32>
    %11 = vector.shape_cast %10 : vector<1x64xf32> to vector<1x1x64xf32>
    %c0_6 = arith.constant 0 : index
    %c0_7 = arith.constant 0 : index
    %c0_8 = arith.constant 0 : index
    %12 = vector.load %arg1[%c0_6, %c0_7, %c0_8] : memref<1x16x64xf32, #tpu.memory_space<vmem>>, vector<1x16x64xf32>
    %c0_9 = arith.constant 0 : index
    %c1 = arith.constant 1 : index
    %c0_10 = arith.constant 0 : index
    %13 = vector.load %arg6[%c0_9, %c1, %c0_10] : memref<1x18x64xf32, #tpu.memory_space<vmem>>, vector<1x16x64xf32>
    tpu.vector_store %arg6[%c0_9, %c1, %c0_10], %12 {strides = array<i32>} : memref<1x18x64xf32, #tpu.memory_space<vmem>>, vector<1x16x64xf32>,
    %c0_11 = arith.constant 0 : index
    %c0_12 = arith.constant 0 : index
    %c0_13 = arith.constant 0 : index
    %14 = vector.load %arg6[%c0_11, %c0_12, %c0_13] : memref<1x18x64xf32, #tpu.memory_space<vmem>>, vector<1x16x64xf32>
    %15 = vector.shape_cast %14 : vector<1x16x64xf32> to vector<16x64xf32>
    %c0_14 = arith.constant 0 : index
    %c0_15 = arith.constant 0 : index
    %c0_16 = arith.constant 0 : index
    %16 = vector.load %arg2[%c0_14, %c0_15, %c0_16] : memref<3x64x64xf32, #tpu.memory_space<vmem>>, vector<1x64x64xf32>
    %17 = vector.shape_cast %16 : vector<1x64x64xf32> to vector<64x64xf32>
    %cst_17 = arith.constant dense<0.000000e+00> : vector<16x64xf32>
    %18 = tpu.matmul %15, %17, %cst_17 {dimension_numbers = #tpu.dot_dimension_numbers<[1], [0], [0], [1], [0, 0, 1, 1], [], []>} : vector<16x64xf32>, vector<64x64xf32>, vector<16x64xf32> -> vector<16x64xf32>
    %c0_18 = arith.constant 0 : index
    %c1_19 = arith.constant 1 : index
    %c0_20 = arith.constant 0 : index
    %19 = vector.load %arg6[%c0_18, %c1_19, %c0_20] : memref<1x18x64xf32, #tpu.memory_space<vmem>>, vector<1x16x64xf32>
    %20 = vector.shape_cast %19 : vector<1x16x64xf32> to vector<16x64xf32>
    %c1_21 = arith.constant 1 : index
    %c0_22 = arith.constant 0 : index
    %c0_23 = arith.constant 0 : index
    %21 = vector.load %arg2[%c1_21, %c0_22, %c0_23] : memref<3x64x64xf32, #tpu.memory_space<vmem>>, vector<1x64x64xf32>
    %22 = vector.shape_cast %21 : vector<1x64x64xf32> to vector<64x64xf32>
    %cst_24 = arith.constant dense<0.000000e+00> : vector<16x64xf32>
    %23 = tpu.matmul %20, %22, %cst_24 {dimension_numbers = #tpu.dot_dimension_numbers<[1], [0], [0], [1], [0, 0, 1, 1], [], []>} : vector<16x64xf32>, vector<64x64xf32>, vector<16x64xf32> -> vector<16x64xf32>
    %24 = arith.addf %18, %23 : vector<16x64xf32>
    %c0_25 = arith.constant 0 : index
    %c2 = arith.constant 2 : index
    %c0_26 = arith.constant 0 : index
    %25 = vector.load %arg6[%c0_25, %c2, %c0_26] : memref<1x18x64xf32, #tpu.memory_space<vmem>>, vector<1x16x64xf32>
    %26 = vector.shape_cast %25 : vector<1x16x64xf32> to vector<16x64xf32>
    %c2_27 = arith.constant 2 : index
    %c0_28 = arith.constant 0 : index
    %c0_29 = arith.constant 0 : index
    %27 = vector.load %arg2[%c2_27, %c0_28, %c0_29] : memref<3x64x64xf32, #tpu.memory_space<vmem>>, vector<1x64x64xf32>
    %28 = vector.shape_cast %27 : vector<1x64x64xf32> to vector<64x64xf32>
    %cst_30 = arith.constant dense<0.000000e+00> : vector<16x64xf32>
    %29 = tpu.matmul %26, %28, %cst_30 {dimension_numbers = #tpu.dot_dimension_numbers<[1], [0], [0], [1], [0, 0, 1, 1], [], []>} : vector<16x64xf32>, vector<64x64xf32>, vector<16x64xf32> -> vector<16x64xf32>
    %30 = arith.addf %24, %29 : vector<16x64xf32>
    %31 = vector.shape_cast %30 : vector<16x64xf32> to vector<1x16x64xf32>
    %cst_31 = arith.constant dense<0.000000e+00> : vector<1x64xf32>
    %32 = vector.multi_reduction <add>, %31, %cst_31 [1] : vector<1x16x64xf32> to vector<1x64xf32>
    %33 = vector.shape_cast %32 : vector<1x64xf32> to vector<1x16x4xf32>
    %cst_32 = arith.constant dense<0.000000e+00> : vector<1x4xf32>
    %34 = vector.multi_reduction <add>, %33, %cst_32 [1] : vector<1x16x4xf32> to vector<1x4xf32>
    %cst_33 = arith.constant 3.906250e-03 : f32
    %35 = vector.broadcast %cst_33 : f32 to vector<1x4xf32>
    %36 = arith.mulf %34, %35 : vector<1x4xf32>
    %37 = vector.shape_cast %36 : vector<1x4xf32> to vector<1x1x4xf32>
    %38 = vector.shape_cast %37 : vector<1x1x4xf32> to vector<1x1x4xf32>
    %39 = vector.broadcast %38 : vector<1x1x4xf32> to vector<1x16x4xf32>
    %40 = vector.shape_cast %39 : vector<1x16x4xf32> to vector<1x64xf32>
    %41 = vector.shape_cast %40 : vector<1x64xf32> to vector<1x1x64xf32>
    %42 = vector.broadcast %41 : vector<1x1x64xf32> to vector<1x16x64xf32>
    %43 = arith.subf %31, %42 : vector<1x16x64xf32>
    %44 = arith.mulf %43, %43 : vector<1x16x64xf32>
    %cst_34 = arith.constant dense<0.000000e+00> : vector<1x64xf32>
    %45 = vector.multi_reduction <add>, %44, %cst_34 [1] : vector<1x16x64xf32> to vector<1x64xf32>
    %46 = vector.shape_cast %45 : vector<1x64xf32> to vector<1x16x4xf32>
    %cst_35 = arith.constant dense<0.000000e+00> : vector<1x4xf32>
    %47 = vector.multi_reduction <add>, %46, %cst_35 [1] : vector<1x16x4xf32> to vector<1x4xf32>
    %cst_36 = arith.constant 3.906250e-03 : f32
    %48 = vector.broadcast %cst_36 : f32 to vector<1x4xf32>
    %49 = arith.mulf %47, %48 : vector<1x4xf32>
    %cst_37 = arith.constant 9.99999974E-6 : f32
    %50 = vector.broadcast %cst_37 : f32 to vector<1x4xf32>
    %51 = arith.addf %49, %50 : vector<1x4xf32>
    %52 = math.rsqrt %51 : vector<1x4xf32>
    %53 = vector.shape_cast %52 : vector<1x4xf32> to vector<1x1x4xf32>
    %54 = vector.shape_cast %53 : vector<1x1x4xf32> to vector<1x1x4xf32>
    %55 = vector.broadcast %54 : vector<1x1x4xf32> to vector<1x16x4xf32>
    %56 = vector.shape_cast %55 : vector<1x16x4xf32> to vector<1x64xf32>
    %57 = vector.shape_cast %56 : vector<1x64xf32> to vector<1x1x64xf32>
    %58 = vector.broadcast %57 : vector<1x1x64xf32> to vector<1x16x64xf32>
    %59 = arith.mulf %43, %58 : vector<1x16x64xf32>
    %60 = vector.broadcast %5 : vector<1x1x64xf32> to vector<1x16x64xf32>
    %61 = arith.mulf %59, %60 : vector<1x16x64xf32>
    %62 = vector.broadcast %7 : vector<1x1x64xf32> to vector<1x16x64xf32>
    %63 = arith.addf %61, %62 : vector<1x16x64xf32>
    %cst_38 = arith.constant 0.000000e+00 : f32
    %64 = vector.broadcast %cst_38 : f32 to vector<1x16x64xf32>
    %65 = arith.maximumf %63, %64 : vector<1x16x64xf32>
    %c0_39 = arith.constant 0 : index
    %c1_40 = arith.constant 1 : index
    %c0_41 = arith.constant 0 : index
    %66 = vector.load %arg6[%c0_39, %c1_40, %c0_41] : memref<1x18x64xf32, #tpu.memory_space<vmem>>, vector<1x16x64xf32>
    tpu.vector_store %arg6[%c0_39, %c1_40, %c0_41], %65 {strides = array<i32>} : memref<1x18x64xf32, #tpu.memory_space<vmem>>, vector<1x16x64xf32>,
    %c0_42 = arith.constant 0 : index
    %c0_43 = arith.constant 0 : index
    %c0_44 = arith.constant 0 : index
    %67 = vector.load %arg6[%c0_42, %c0_43, %c0_44] : memref<1x18x64xf32, #tpu.memory_space<vmem>>, vector<1x16x64xf32>
    %68 = vector.shape_cast %67 : vector<1x16x64xf32> to vector<16x64xf32>
    %c0_45 = arith.constant 0 : index
    %c0_46 = arith.constant 0 : index
    %c0_47 = arith.constant 0 : index
    %69 = vector.load %arg3[%c0_45, %c0_46, %c0_47] : memref<3x64x64xf32, #tpu.memory_space<vmem>>, vector<1x64x64xf32>
    %70 = vector.shape_cast %69 : vector<1x64x64xf32> to vector<64x64xf32>
    %cst_48 = arith.constant dense<0.000000e+00> : vector<16x64xf32>
    %71 = tpu.matmul %68, %70, %cst_48 {dimension_numbers = #tpu.dot_dimension_numbers<[1], [0], [0], [1], [0, 0, 1, 1], [], []>} : vector<16x64xf32>, vector<64x64xf32>, vector<16x64xf32> -> vector<16x64xf32>
    %c0_49 = arith.constant 0 : index
    %c1_50 = arith.constant 1 : index
    %c0_51 = arith.constant 0 : index
    %72 = vector.load %arg6[%c0_49, %c1_50, %c0_51] : memref<1x18x64xf32, #tpu.memory_space<vmem>>, vector<1x16x64xf32>
    %73 = vector.shape_cast %72 : vector<1x16x64xf32> to vector<16x64xf32>
    %c1_52 = arith.constant 1 : index
    %c0_53 = arith.constant 0 : index
    %c0_54 = arith.constant 0 : index
    %74 = vector.load %arg3[%c1_52, %c0_53, %c0_54] : memref<3x64x64xf32, #tpu.memory_space<vmem>>, vector<1x64x64xf32>
    %75 = vector.shape_cast %74 : vector<1x64x64xf32> to vector<64x64xf32>
    %cst_55 = arith.constant dense<0.000000e+00> : vector<16x64xf32>
    %76 = tpu.matmul %73, %75, %cst_55 {dimension_numbers = #tpu.dot_dimension_numbers<[1], [0], [0], [1], [0, 0, 1, 1], [], []>} : vector<16x64xf32>, vector<64x64xf32>, vector<16x64xf32> -> vector<16x64xf32>
    %77 = arith.addf %71, %76 : vector<16x64xf32>
    %c0_56 = arith.constant 0 : index
    %c2_57 = arith.constant 2 : index
    %c0_58 = arith.constant 0 : index
    %78 = vector.load %arg6[%c0_56, %c2_57, %c0_58] : memref<1x18x64xf32, #tpu.memory_space<vmem>>, vector<1x16x64xf32>
    %79 = vector.shape_cast %78 : vector<1x16x64xf32> to vector<16x64xf32>
    %c2_59 = arith.constant 2 : index
    %c0_60 = arith.constant 0 : index
    %c0_61 = arith.constant 0 : index
    %80 = vector.load %arg3[%c2_59, %c0_60, %c0_61] : memref<3x64x64xf32, #tpu.memory_space<vmem>>, vector<1x64x64xf32>
    %81 = vector.shape_cast %80 : vector<1x64x64xf32> to vector<64x64xf32>
    %cst_62 = arith.constant dense<0.000000e+00> : vector<16x64xf32>
    %82 = tpu.matmul %79, %81, %cst_62 {dimension_numbers = #tpu.dot_dimension_numbers<[1], [0], [0], [1], [0, 0, 1, 1], [], []>} : vector<16x64xf32>, vector<64x64xf32>, vector<16x64xf32> -> vector<16x64xf32>
    %83 = arith.addf %77, %82 : vector<16x64xf32>
    %84 = vector.shape_cast %83 : vector<16x64xf32> to vector<1x16x64xf32>
    %cst_63 = arith.constant dense<0.000000e+00> : vector<1x64xf32>
    %85 = vector.multi_reduction <add>, %84, %cst_63 [1] : vector<1x16x64xf32> to vector<1x64xf32>
    %86 = vector.shape_cast %85 : vector<1x64xf32> to vector<1x16x4xf32>
    %cst_64 = arith.constant dense<0.000000e+00> : vector<1x4xf32>
    %87 = vector.multi_reduction <add>, %86, %cst_64 [1] : vector<1x16x4xf32> to vector<1x4xf32>
    %cst_65 = arith.constant 3.906250e-03 : f32
    %88 = vector.broadcast %cst_65 : f32 to vector<1x4xf32>
    %89 = arith.mulf %87, %88 : vector<1x4xf32>
    %90 = vector.shape_cast %89 : vector<1x4xf32> to vector<1x1x4xf32>
    %91 = vector.shape_cast %90 : vector<1x1x4xf32> to vector<1x1x4xf32>
    %92 = vector.broadcast %91 : vector<1x1x4xf32> to vector<1x16x4xf32>
    %93 = vector.shape_cast %92 : vector<1x16x4xf32> to vector<1x64xf32>
    %94 = vector.shape_cast %93 : vector<1x64xf32> to vector<1x1x64xf32>
    %95 = vector.broadcast %94 : vector<1x1x64xf32> to vector<1x16x64xf32>
    %96 = arith.subf %84, %95 : vector<1x16x64xf32>
    %97 = arith.mulf %96, %96 : vector<1x16x64xf32>
    %cst_66 = arith.constant dense<0.000000e+00> : vector<1x64xf32>
    %98 = vector.multi_reduction <add>, %97, %cst_66 [1] : vector<1x16x64xf32> to vector<1x64xf32>
    %99 = vector.shape_cast %98 : vector<1x64xf32> to vector<1x16x4xf32>
    %cst_67 = arith.constant dense<0.000000e+00> : vector<1x4xf32>
    %100 = vector.multi_reduction <add>, %99, %cst_67 [1] : vector<1x16x4xf32> to vector<1x4xf32>
    %cst_68 = arith.constant 3.906250e-03 : f32
    %101 = vector.broadcast %cst_68 : f32 to vector<1x4xf32>
    %102 = arith.mulf %100, %101 : vector<1x4xf32>
    %cst_69 = arith.constant 9.99999974E-6 : f32
    %103 = vector.broadcast %cst_69 : f32 to vector<1x4xf32>
    %104 = arith.addf %102, %103 : vector<1x4xf32>
    %105 = math.rsqrt %104 : vector<1x4xf32>
    %106 = vector.shape_cast %105 : vector<1x4xf32> to vector<1x1x4xf32>
    %107 = vector.shape_cast %106 : vector<1x1x4xf32> to vector<1x1x4xf32>
    %108 = vector.broadcast %107 : vector<1x1x4xf32> to vector<1x16x4xf32>
    %109 = vector.shape_cast %108 : vector<1x16x4xf32> to vector<1x64xf32>
    %110 = vector.shape_cast %109 : vector<1x64xf32> to vector<1x1x64xf32>
    %111 = vector.broadcast %110 : vector<1x1x64xf32> to vector<1x16x64xf32>
    %112 = arith.mulf %96, %111 : vector<1x16x64xf32>
    %113 = vector.broadcast %9 : vector<1x1x64xf32> to vector<1x16x64xf32>
    %114 = arith.mulf %112, %113 : vector<1x16x64xf32>
    %115 = vector.broadcast %11 : vector<1x1x64xf32> to vector<1x16x64xf32>
    %116 = arith.addf %114, %115 : vector<1x16x64xf32>
    %c0_70 = arith.constant 0 : index
    %c0_71 = arith.constant 0 : index
    %c0_72 = arith.constant 0 : index
    %117 = vector.load %arg1[%c0_70, %c0_71, %c0_72] : memref<1x16x64xf32, #tpu.memory_space<vmem>>, vector<1x16x64xf32>
    %118 = arith.addf %117, %116 : vector<1x16x64xf32>
    %c0_73 = arith.constant 0 : index
    %c0_74 = arith.constant 0 : index
    %c0_75 = arith.constant 0 : index
    %119 = vector.load %arg5[%c0_73, %c0_74, %c0_75] : memref<1x16x64xf32, #tpu.memory_space<vmem>>, vector<1x16x64xf32>
    tpu.vector_store %arg5[%c0_73, %c0_74, %c0_75], %118 {strides = array<i32>} : memref<1x16x64xf32, #tpu.memory_space<vmem>>, vector<1x16x64xf32>,
    return
  }
  func.func @transform_0(%arg0: i32) -> (i32, i32, i32) {
    %c0_i32 = arith.constant 0 : i32
    %c0_i32_0 = arith.constant 0 : i32
    %c0_i32_1 = arith.constant 0 : i32
    return %arg0, %c0_i32, %c0_i32_0 : i32, i32, i32
  }
  func.func @transform_1(%arg0: i32) -> (i32, i32, i32) {
    %c0_i32 = arith.constant 0 : i32
    %c0_i32_0 = arith.constant 0 : i32
    %c0_i32_1 = arith.constant 0 : i32
    %c0_i32_2 = arith.constant 0 : i32
    return %c0_i32, %c0_i32_0, %c0_i32_1 : i32, i32, i32
  }
  func.func @transform_2(%arg0: i32) -> (i32, i32, i32) {
    %c0_i32 = arith.constant 0 : i32
    %c0_i32_0 = arith.constant 0 : i32
    %c0_i32_1 = arith.constant 0 : i32
    %c0_i32_2 = arith.constant 0 : i32
    return %c0_i32, %c0_i32_0, %c0_i32_1 : i32, i32, i32
  }
  func.func @transform_3(%arg0: i32) -> (i32, i32) {
    %c0_i32 = arith.constant 0 : i32
    %c0_i32_0 = arith.constant 0 : i32
    %c0_i32_1 = arith.constant 0 : i32
    return %c0_i32, %c0_i32_0 : i32, i32
  }
  func.func @transform_4(%arg0: i32) -> (i32, i32, i32) {
    %c0_i32 = arith.constant 0 : i32
    %c0_i32_0 = arith.constant 0 : i32
    %c0_i32_1 = arith.constant 0 : i32
    return %arg0, %c0_i32, %c0_i32_0 : i32, i32, i32
  }
}

</mosaic_0001>

<bundles_post_ra>
// kernel: tpu_custom_call.1
= control target key start
LH: loop header
LB: loop body
LE: loop exit
PB: predicated region body
PF: predicated region fallthrough
CT: control target
= control target key end

     0   :  { %s3389_s0 = inlined_call_operand.hbm [shape: f32[2,16,64], index: 0, kind: input, shape index: {}]   ;;  %s3390_s1 = inlined_call_operand.hbm [shape: f32[3,64,64], index: 1, kind: input, shape index: {}]   ;;  %s3391_s2 = inlined_call_operand.hbm [shape: f32[3,64,64], index: 2, kind: input, shape index: {}]   ;;  %s3392_s3 = inlined_call_operand.vmem [shape: f32[4,64], index: 3, kind: input, shape index: {}]   ;;  %s3393_s4 = inlined_call_operand.hbm [shape: f32[2,16,64], index: 4, kind: output, shape index: {}]  }
   0x1   :  { %3472 = sst [smem:[#allocation23_spill]] %s3389_s0 }
   0x2   :  { %3473 = sst [smem:[#allocation24_spill]] %s3390_s1 }
   0x3   :  { %3474 = sst [smem:[#allocation25_spill]] %s3391_s2 }
   0x4   :  { %3475 = sst [smem:[#allocation26_spill]] %s3392_s3 }
   0x5   :  { %3476 = sst [smem:[#allocation27_spill]] %s3393_s4 }
   0x6   :  { %9 = vsyncpa [#allocation4], 0 }
   0x7   :  { %11 = vsyncpa [#allocation4 + $0x1], 0 }
   0x8   :  { %12 = vsyncpa [#allocation7], 0 }
   0x9   :  { %13 = vsyncpa [#allocation5], 0 }
   0xa   :  { %15 = vsyncpa [#allocation5 + $0x1], 0  ;;  %s2755_s15 = smov 0   ;;  %s2757_s16 = smov 0  }
   0xb   :  { %s2759_s17 = smov 0   ;;  %s2761_s18 = smov 0  }
   0xc LB: > { %3477 = sst [smem:[#allocation13_spill]] %s2676_s15  ;;  %s2776_s19 = sadd.s32 4294967295, %s2688_s18   ;;  %s2688_s18 = sphi %s2761_s18, %s3542_s18   ;;  %s2684_s17 = sphi %s2759_s17, %s3545_s17   ;;  %s2680_s16 = sphi %s2757_s16, %s3544_s16   ;;  %s2676_s15 = sphi %s2755_s15, %s3543_s15  }
   0xd   : > { %3478 = sst [smem:[#allocation14_spill]] %s2680_s16  ;;  %s2115_s20 = sadd.s32 4294967294, %s2688_s18  }
   0xe   : > { %3479 = sst [smem:[#allocation15_spill]] %s2684_s17  ;;  %p41_p0 = scmp.ne.s32.totalorder %s2680_s16, %s2676_s15 }
   0xf   : > { %3480 = sst [smem:[#allocation16_spill]] %s2688_s18  ;;  %p3394_p1 = scmp.eq.s32.totalorder %s2776_s19, 0 }
  0x10   : > { %p134_p3 = scmp.eq.s32.totalorder %s2115_s20, 1  ;;  %p2116_p5 = scmp.ge.s32.totalorder %s2688_s18, 1 }
  0x11   : > { %p2785_p4 = por %p3394_p1, %p41_p0  ;;  %p141_p7 = scmp.lt.s32.totalorder %s2688_s18, 3 }
  0x12   : > { %p2790_p6 = por %p134_p3, %p41_p0  ;;  %s2690_s24 = smov [#allocation6]  }
  0x13   : > { %s3481_s21 = scalar_select %p2785_p4, 1, 0 }
  0x14   : > { %s3482_s22 = scalar_select %p2790_p6, 1, 0 }
  0x15   : > { %p2795_p8 = pnand %p2116_p5, %p141_p7  ;;  %s153_s25 = sshll.u32 %s2690_s24, 4  ;;  %s2799_s25 = int_to_ptr.vmem [resolvable:$true] %s153_s25 }
  0x16   : > { %3483 = sst [smem:[#allocation17_spill]] %s3482_s22  ;;  %s2691_s27 = smov [#allocation8]  }
  0x17   : > { %p2437_p9 = pneg %p2795_p8  ;;  %s166_s28 = sshll.u32 %s2691_s27, 4  ;;  %s2810_s28 = int_to_ptr.vmem [resolvable:$true] %s166_s28 }
  0x18   : > { %s3486_s1 = sld [smem:[#allocation24_spill]] }
  0x19   : > { %p2806_p11 = pnand %p2437_p9, %p3394_p1 }
  0x1b   : > { %p2534_p13 = pneg %p2806_p11 }
  0x1e   : > { %s2532_s5 = scalar_lea.hbm %s3486_s1, 3072 }
  0x1f   : > { %p2533_p12 = scmp.ne.s32.totalorder %s3486_s1, %s2532_s5  ;;  %p2539_p5 = scmp.lt.u32.totalorder %s2532_s5, %s3486_s1 }
  0x21   : > { %p2535_p0 = pnand %p2534_p13, %p2533_p12 }
  0x23   : > { %p2536_p3 = pneg %p2535_p0 }
  0x25   : > { %p2541_p7 = pnand %p2539_p5, %p2536_p3 }
  0x27   : > { %2544 = shalt.err (!%p2541_p7)
}
  0x28   : > { %s2545_s10 = scalar_lea.vmem %s2799_s25, 3072  ;;  %p2553_p2 = scmp.lt.s32.totalorder %s2799_s25, %s2799_s25 }
  0x29   : > { %p2546_p9 = scmp.ne.s32.totalorder %s2799_s25, %s2545_s10  ;;  %p2554_p12 = scmp.lt.s32.totalorder %s2545_s10, %s2545_s10 }
  0x2b   : > { %p2548_p10 = pnand %p2546_p9, %p2534_p13  ;;  %p2555_p0 = por %p2554_p12, %p2553_p2 }
  0x2d   : > { %p2549_p1 = pneg %p2548_p10 }
  0x2f   : > { %p2556_p6 = pnand %p2555_p0, %p2549_p1 }
  0x31   : > { %2559 = shalt.err (!%p2556_p6)
}
  0x32   : > { %s2692_s11 = smov 128   ;;  %s2693_s12 = smov 8  }
  0x33   : > { %2440 = dma.hbm_to_vmem [thread:$0]  (!%p2806_p11), %s3486_s1, 3072, %s2799_s25, [#allocation7], %s2692_s11, %s2692_s11, %s2693_s12  }
  0x34   : > { %s3487_s2 = sld [smem:[#allocation25_spill]] }
  0x3a   : > { %s2560_s27 = scalar_lea.hbm %s3487_s2, 3072 }
  0x3b   : > { %p2561_p1 = scmp.ne.s32.totalorder %s3487_s2, %s2560_s27  ;;  %p2567_p10 = scmp.lt.u32.totalorder %s2560_s27, %s3487_s2 }
  0x3d   : > { %p2563_p2 = pnand %p2561_p1, %p2534_p13 }
  0x3f   : > { %p2564_p6 = pneg %p2563_p2 }
  0x41   : > { %p2569_p3 = pnand %p2567_p10, %p2564_p6 }
  0x43   : > { %2572 = shalt.err (!%p2569_p3)
}
  0x44   : > { %s2573_s25 = scalar_lea.vmem %s2810_s28, 3072  ;;  %p2581_p12 = scmp.lt.s32.totalorder %s2810_s28, %s2810_s28 }
  0x45   : > { %p2574_p5 = scmp.ne.s32.totalorder %s2810_s28, %s2573_s25  ;;  %p2582_p0 = scmp.lt.s32.totalorder %s2573_s25, %s2573_s25 }
  0x47   : > { %p2576_p7 = pnand %p2574_p5, %p2534_p13  ;;  %p2583_p1 = por %p2582_p0, %p2581_p12 }
  0x49   : > { %p2577_p9 = pneg %p2576_p7 }
  0x4b   : > { %p2584_p2 = pnand %p2583_p1, %p2577_p9 }
  0x4d   : > { %2587 = shalt.err (!%p2584_p2)
}
  0x4e   : > { %2443 = dma.hbm_to_vmem [thread:$0]  (!%p2806_p11), %s3487_s2, 3072, %s2810_s28, [#allocation7], %s2692_s11, %s2692_s11, %s2693_s12  }
  0x4f   : > { %s2871_s26 = sadd.s32 1, %s2688_s18   ;;  %s28_s9 = sadd.s32 1, %s2684_s17 }
  0x50   : > { %3488 = sst [smem:[#allocation18_spill]] %s2871_s26  ;;  %s25_s10 = ssub.s32 %s2688_s18, %s2871_s26 }
  0x51   : > { %p35_p13 = scmp.ne.s32.totalorder %s2684_s17, %s2680_s16  ;;  %p26_p6 = scmp.eq.s32.totalorder %s25_s10, 0 }
  0x52   : > { %p36_p10 = scmp.eq.s32.totalorder %s2688_s18, 0  ;;  %p3489_p3 = scmp.eq.s32.totalorder %s2776_s19, 1 }
  0x53   : > { %p2454_p7 = scmp.lt.s32.totalorder %s2688_s18, 2  ;;  %s183_s20 = sand.u32 1, %s2684_s17  }
  0x54   : > { %p2881_p5 = por %p3489_p3, %p35_p13  ;;  %p37_p9 = por %p36_p10, %p35_p13 }
  0x55   : > { %s2887_s14 = scalar_select %p26_p6, %s2684_s17, %s28_s9  }
  0x56   : > { %s3490_s13 = scalar_select %p2881_p5, 1, 0 }
  0x57   : > { %3492 = sst [smem:[#allocation20_spill]] %s2887_s14  ;;  %s2120_s24 = sshll.u32 %s183_s20, 4 }
  0x58   : > { %3491 = sst [smem:[#allocation19_spill]] %s3490_s13  ;;  %s2145_s28 = sshll.u32 %s2688_s18, 8 }
  0x59   : > { %s3493_s0 = sld [smem:[#allocation23_spill]]  ;;  %s187_s5 = scalar_lea.vmem [#allocation3], %s2120_s24 }
  0x5a   : > { %s194_s6 = sshll.u32 %s187_s5, 4  ;;  %p2898_p11 = pnand %p2454_p7, %p37_p9  ;;  %s2896_s6 = int_to_ptr.vmem [resolvable:$true] %s194_s6 }
  0x5b   : > { %s2902_s7 = scalar_lea.sflag [#allocation4], %s183_s20 }
  0x5c   : > { %p2590_p0 = pneg %p2898_p11 }
  0x5f   : > { %s2894_s30 = scalar_lea.hbm %s3493_s0, %s2145_s28  ;;  %s2593_s24 = scalar_lea.hbm %s3493_s0, 512 }
  0x60   : > { %s2588_s8 = scalar_lea.hbm %s2894_s30, 256  ;;  %p2594_p13 = scmp.lt.u32.totalorder %s2894_s30, %s3493_s0 }
  0x61   : > { %p2589_p12 = scmp.ne.s32.totalorder %s2894_s30, %s2588_s8  ;;  %p2595_p6 = scmp.lt.u32.totalorder %s2593_s24, %s2588_s8 }
  0x62   : > { %p2597_p3 = scmp.lt.u32.totalorder %s2588_s8, %s2894_s30 }
  0x63   : > { %p2591_p1 = pnand %p2590_p0, %p2589_p12  ;;  %p2596_p10 = por %p2595_p6, %p2594_p13 }
  0x65   : > { %p2592_p2 = pneg %p2591_p1  ;;  %p2598_p7 = por %p2597_p3, %p2596_p10 }
  0x67   : > { %p2599_p9 = pnand %p2598_p7, %p2592_p2 }
  0x69   : > { %2602 = shalt.err (!%p2599_p9)
}
  0x6a   : > { %s2603_s20 = scalar_lea.vmem %s2896_s6, 256  ;;  %s2694_s29 = smov [#allocation3]  }
  0x6b   : > { %p2604_p12 = scmp.ne.s32.totalorder %s2896_s6, %s2603_s20  ;;  %s2608_s5 = sshll.u32 %s2694_s29, 4  ;;  %s2609_s5 = int_to_ptr.vmem [resolvable:$false] %s2608_s5 }
  0x6c   : > { %s2610_s9 = scalar_lea.vmem %s2609_s5, 512  ;;  %p2611_p4 = scmp.lt.s32.totalorder %s2896_s6, %s2609_s5 }
  0x6d   : > { %p2606_p1 = pnand %p2604_p12, %p2590_p0  ;;  %p2612_p13 = scmp.lt.s32.totalorder %s2610_s9, %s2603_s20 }
  0x6f   : > { %p2607_p5 = pneg %p2606_p1  ;;  %p2613_p6 = por %p2612_p13, %p2611_p4 }
  0x71   : > { %p2614_p10 = pnand %p2613_p6, %p2607_p5 }
  0x73   : > { %2617 = shalt.err (!%p2614_p10)
}
  0x74   : > { %2447 = dma.hbm_to_vmem [thread:$0]  (!%p2898_p11), %s2894_s30, 256, %s2896_s6, %s2902_s7, %s2692_s11, %s2692_s11, %s2693_s12  }
  0x75   : > { %206 = sbr.rel (%p2795_p8) target bundleno = 2063 (0x80f), region = 36 }
  0x7c   : > { %s2936_s8 = sand.u32 1, %s2680_s16   ;;  %p3497_p4 = scmp.ne.s32.totalorder %s3481_s21, 0 }
  0x7d   : > { %3495 = sst [smem:[#allocation21_spill]] %s2936_s8  ;;  %s3397_s10 = sshll.u32 %s2936_s8, 4 }
  0x7e   : > { %s209_s24 = scalar_lea.sflag [#allocation4], %s2936_s8  ;;  %s2942_s25 = scalar_lea.vmem [#allocation3], %s3397_s10 }
  0x7f   : > { %3496 = sst [smem:[#allocation22_spill]] %s2942_s25 }
  0x80   : > { %2663 = dma.done.wait (%p3497_p4), %s209_s24, 256  }
  0x81   : > { %2665 = vsyncadd (%p3497_p4), %s209_s24, 4294967040  ;;  %p3498_p5 = scmp.eq.s32.totalorder %s2776_s19, 0 }
  0x83   : > { %2667 = dma.done.wait (%p3498_p5), [#allocation7], 6144   ;;  %p3499_p8 = pmov %p3498_p5 }
  0x84   : > { %vm245_vm0 = vcmask 516096   ;;  %v2695_v0 = vmov 0.0   ;;  %v267_v1 = vld [vmem:[#allocation6 + $0x40] sm:$0xff]  ;;  %v268_v2 = vld [vmem:[#allocation6 + $0x48] sm:$0xff]  ;;  %v269_v3 = vld [vmem:[#allocation6 + $0x50] sm:$0xff]  ;;  %vm251_vm1 = vcmask 523264  }
  0x85   : > { %2669 = vsyncadd (%p3499_p8), [#allocation7], 4294961152  ;;  %246 = vst.msk [vmem:[#allocation2] sm:$0x1] %vm245_vm0, %v2695_v0  ;;  %v2321_v4 = vpack.c.bf16 %v268_v2, %v267_v1  ;;  %v270_v5 = vld [vmem:[#allocation6 + $0x58] sm:$0xff]  ;;  %v271_v7 = vld [vmem:[#allocation6 + $0x60] sm:$0xff] }
  0x86   : > { %247 = vst.msk [vmem:[#allocation2 + $0x11] sm:$0x1] %vm245_vm0, %v2695_v0  ;;  %v2325_v6 = vpack.c.bf16 %v270_v5, %v269_v3  ;;  %v272_v8 = vld [vmem:[#allocation6 + $0x68] sm:$0xff]  ;;  %v249_v9 = vld [vmem:[%s2942_s25] sm:$0xff]  ;;  %v274_v13 = vld [vmem:[#allocation6 + $0x78] sm:$0xff]  ;;  %s3440_s21 = smov 116   ;;  %v590_v3 = vlaneseq }
  0x87   : > { %2322 = vmatprep.subr.bf16.mxu0 %v2321_v4  ;;  %252 = vst.msk [vmem:[#allocation2 + $0x1] sm:$0xff] %vm251_vm1, %v249_v9  ;;  %v250_v10 = vld [vmem:[%s2942_s25 + $0x8] sm:$0xff]  ;;  %v2329_v11 = vpack.c.bf16 %v272_v8, %v271_v7  ;;  %v273_v12 = vld [vmem:[#allocation6 + $0x70] sm:$0xff]  ;;  %v256_v16 = vld [vmem:[#allocation6] sm:$0xff]  ;;  %s3436_s23 = smov 124   ;;  %s3438_s11 = smov 112  }
  0x88   : > { %2324 = vmatpush3.bf16.msra.mxu0 %v2321_v4  ;;  %253 = vst.msk [vmem:[#allocation2 + $0x9] sm:$0xff] %vm251_vm1, %v250_v10  ;;  %v2333_v14 = vpack.c.bf16 %v274_v13, %v273_v12  ;;  %v257_v17 = vld [vmem:[#allocation6 + $0x8] sm:$0xff]  ;;  %v258_v19 = vld [vmem:[#allocation6 + $0x10] sm:$0xff]  ;;  %v259_v20 = vld [vmem:[#allocation6 + $0x18] sm:$0xff]  ;;  %s3434_s12 = smov 120   ;;  %s3448_s30 = smov 104  }
  0x89   : > { %2326 = vmatprep.subr.bf16.mxu0 %v2325_v6  ;;  %v2337_v18 = vpack.c.bf16 %v257_v17, %v256_v16  ;;  %v2341_v22 = vpack.c.bf16 %v259_v20, %v258_v19  ;;  %v260_v24 = vld [vmem:[#allocation6 + $0x20] sm:$0xff]  ;;  %v261_v25 = vld [vmem:[#allocation6 + $0x28] sm:$0xff]  ;;  %v262_v27 = vld [vmem:[#allocation6 + $0x30] sm:$0xff]  ;;  %s3446_s6 = smov 108   ;;  %s3444_s7 = smov 96   ;;  %v2987_v7 = vshrl.u32 %v590_v3, 7 }
  0x8a   : > { %v2345_v26 = vpack.c.bf16 %v261_v25, %v260_v24  ;;  %v263_v28 = vld [vmem:[#allocation6 + $0x38] sm:$0xff]  ;;  %v440_v30 = vld [vmem:[#allocation6 + $0x80] sm:$0xff]  ;;  %v441_v31 = vld [vmem:[#allocation6 + $0x88] sm:$0xff]  ;;  %s3442_s28 = smov 100   ;;  %s3426_s27 = smov 88   ;;  %vm684_vm2 = vcmask 31744  }
  0x8b   : > { %v2349_v29 = vpack.c.bf16 %v263_v28, %v262_v27  ;;  %v2353_v32 = vpack.c.bf16 %v441_v31, %v440_v30  ;;  %v442_v33 = vld [vmem:[#allocation6 + $0x90] sm:$0xff]  ;;  %v443_v34 = vld [vmem:[#allocation6 + $0x98] sm:$0xff]  ;;  %v444_v38 = vld [vmem:[#allocation6 + $0xa0] sm:$0xff]  ;;  %s3418_s20 = smov 92   ;;  %s3406_s29 = smov 80   ;;  %vm798_vm3 = vcmask 64512  }
  0x8c   : > { %2328 = vmatpush3.bf16.msra.mxu0 %v2325_v6  ;;  %v2357_v36 = vpack.c.bf16 %v443_v34, %v442_v33  ;;  %v445_v39 = vld [vmem:[#allocation6 + $0xa8] sm:$0xff]  ;;  %v446_v41 = vld [vmem:[#allocation6 + $0xb0] sm:$0xff]  ;;  %v447_v42 = vld [vmem:[#allocation6 + $0xb8] sm:$0xff]  ;;  %s3404_s5 = smov 84   ;;  %s3402_s9 = smov 72   ;;  %vm800_vm4 = vcmask 97280  }
  0x8d   : > { %2330 = vmatprep.subr.bf16.mxu0 %v2329_v11  ;;  %v2361_v40 = vpack.c.bf16 %v445_v39, %v444_v38  ;;  %v2365_v43 = vpack.c.bf16 %v447_v42, %v446_v41  ;;  %s3400_s24 = smov 76   ;;  %s3398_s10 = smov 68   ;;  %v2711_v1 = vmov 1983009808   ;;  %v2712_v12 = vmov 1934713408  }
  0x8e   : > { %v264_v15 = vld [vmem:[#allocation2 + $0x1] sm:$0xff]  ;;  %v588_v2 = vunpack.c.l.s4 %v2711_v1  ;;  %v620_v13 = vunpack.c.l.s4 %v2712_v12  ;;  %vm802_vm5 = vcmask 130048   ;;  %vm804_vm6 = vcmask 162816   ;;  %s3515_s0 = smov 24   ;;  %s3516_s1 = smov 44  }
  0x8f   : > { %2223 = vmatprep.mubr.msk.f32.mxu0 %vm251_vm1, %v264_v15  ;;  %v265_v21 = vld [vmem:[#allocation2 + $0x9] sm:$0xff]  ;;  %v254_v23 = vld [vmem:[#allocation2] sm:$0xff]  ;;  %vm806_vm7 = vcmask 195584   ;;  %vm808_vm8 = vcmask 228352   ;;  %vm810_vm9 = vcmask 261120   ;;  %vm812_vm10 = vcmask 293888  }
  0x90   : > { %2332 = vmatpush3.bf16.msra.mxu0 %v2329_v11  ;;  %v255_v35 = vld [vmem:[#allocation2 + $0x8] sm:$0xff]  ;;  %v589_v6 = vunpack.c.0.s8 %v588_v2  ;;  %vm814_vm11 = vcmask 326656   ;;  %vm816_vm12 = vcmask 359424   ;;  %vm818_vm13 = vcmask 392192   ;;  %s3517_s2 = smov 48   ;;  %s3518_s14 = smov 28  }
  0x91   : > { %2334 = vmatprep.subr.bf16.mxu0 %v2333_v14  ;;  %v437_v37 = vld [vmem:[#allocation2 + $0x2] sm:$0xff]  ;;  %v438_v44 = vld [vmem:[#allocation2 + $0xa] sm:$0xff]  ;;  %vm820_vm14 = vcmask 424960   ;;  %vm822_vm15 = vcmask 457728   ;;  %vm824_vm0 = vcmask 490496   ;;  %s3519_s17 = smov 56  }
  0x92   : > { %v2990_v11 = vsub.s32 %v589_v6, %v2987_v7  ;;  %s3520_s16 = smov 52   ;;  %s3521_s26 = smov 60  }
  0x93   : > { %s3522_s3 = sld [smem:[#allocation26_spill]]  ;;  %s3523_s18 = smov 120  }
  0x94   : > { %2336 = vmatpush3.bf16.msra.mxu0 %v2333_v14  ;;  %s3524_s22 = smov 124   ;;  %s3526_s15 = smov 116  }
  0x95   : > { %2338 = vmatprep.subr.bf16.mxu0 %v2337_v18  ;;  %s3527_s4 = smov 104   ;;  %s3528_s13 = smov 108  }
  0x96   : > { %s3529_s8 = smov 96   ;;  %s3530_s25 = smov 100  }
  0x97   : > { %2224 = vmatmul.mubr.msk.f32.vlgmr.msra.gmra.mrb[0].mxu0 %vm251_vm1, %v265_v21  ;;  %v621_v21 = vunpack.c.0.s8 %v620_v13 }
  0x98   : > { %2340 = vmatpush3.bf16.msra.mxu0 %v2337_v18  ;;  %2242 = vmatprep.mubr.msk.f32.mxu0 %vm251_vm1, %v254_v23 }
  0x99   : > { %2342 = vmatprep.subr.bf16.mxu0 %v2341_v22  ;;  %v2998_v30 = vsub.s32 %v621_v21, %v2987_v7 }
  0x9c   : > { %2344 = vmatpush3.bf16.msra.mxu0 %v2341_v22 }
  0x9d   : > { %2346 = vmatprep.subr.bf16.mxu0 %v2345_v26 }
  0xa0   : > { %2348 = vmatpush3.bf16.msra.mxu0 %v2345_v26 }
  0xa1   : > { %2350 = vmatprep.subr.bf16.mxu0 %v2349_v29 }
  0xa4   : > { %2352 = vmatpush3.bf16.msra.mxu0 %v2349_v29 }
  0xa5   : > { %2354 = vmatprep.subr.bf16.mxu0 %v2353_v32 }
  0xa7   : > { %2243 = vmatmul.mubr.msk.f32.vlgmr.msra.gmra.mrb[0].mxu0 %vm251_vm1, %v255_v35 }
  0xa8   : > { %2356 = vmatpush3.bf16.msra.mxu0 %v2353_v32  ;;  %2261 = vmatprep.mubr.msk.f32.mxu0 %vm251_vm1, %v437_v37 }
  0xa9   : > { %2358 = vmatprep.subr.bf16.mxu0 %v2357_v36 }
  0xac   : > { %2360 = vmatpush3.bf16.msra.mxu0 %v2357_v36 }
  0xad   : > { %2362 = vmatprep.subr.bf16.mxu0 %v2361_v40 }
  0xb0   : > { %2364 = vmatpush3.bf16.msra.mxu0 %v2361_v40 }
  0xb1   : > { %2366 = vmatprep.subr.bf16.mxu0 %v2365_v43 }
  0xb4   : > { %2368 = vmatpush3.bf16.msra.mxu0 %v2365_v43 }
  0xb7   : > { %2262 = vmatmul.mubr.msk.f32.vlgmr.msra.gmra.mrb[0].mxu0 %vm251_vm1, %v438_v44 }
 0x18a   : > { %v2964_v45 = vpop.f32.mrb[0].mxu0 }
 0x18b   : > { %v532_v46 = vsel %vm251_vm1, %v2964_v45, 0.0  ;;  %v2968_v47 = vpop.f32.mrb[1].mxu0 }
 0x18c   : > { %v531_v48 = vsel %vm251_vm1, %v2968_v47, 0.0 }
 0x18d   : > { %v533_v49 = vadd.f32 %v532_v46, %v531_v48 }
 0x18f   : > { %v534_v50 = vrot.slane %v533_v49, 4 }
 0x191   : > { %v535_v51 = vadd.f32 %v534_v50, %v533_v49 }
 0x193   : > { %v536_v52 = vrot.slane %v535_v51, 2 }
 0x195   : > { %v537_v53 = vadd.f32 %v536_v52, %v535_v51 }
 0x197   : > { %v538_v54 = vrot.slane %v537_v53, 1 }
 0x199   : > { %v539_v55 = vadd.f32 %v538_v54, %v537_v53 }
 0x19b   : > { %547 = vrot.lane.b32.xlu1 %v539_v55, %s3440_s21  ;;  %541 = vrot.lane.b32.xlu0 %v539_v55, %s3436_s23 }
 0x19f   : > { %550 = vrot.lane.b32.xlu1 %v539_v55, %s3438_s11  ;;  %544 = vrot.lane.b32.xlu0 %v539_v55, %s3434_s12 }
 0x1a3   : > { %556 = vrot.lane.b32.xlu1 %v539_v55, %s3448_s30  ;;  %553 = vrot.lane.b32.xlu0 %v539_v55, %s3446_s6 }
 0x1a7   : > { %562 = vrot.lane.b32.xlu1 %v539_v55, %s3444_s7  ;;  %559 = vrot.lane.b32.xlu0 %v539_v55, %s3442_s28 }
 0x1ab   : > { %568 = vrot.lane.b32.xlu1 %v539_v55, %s3426_s27  ;;  %565 = vrot.lane.b32.xlu0 %v539_v55, %s3418_s20  ;;  %s3452_s20 = smov 48   ;;  %s3428_s27 = smov 60  }
 0x1af   : > { %574 = vrot.lane.b32.xlu1 %v539_v55, %s3406_s29  ;;  %571 = vrot.lane.b32.xlu0 %v539_v55, %s3404_s5  ;;  %s3414_s5 = smov 36   ;;  %s3416_s29 = smov 16  }
 0x1b3   : > { %580 = vrot.lane.b32.xlu1 %v539_v55, %s3402_s9  ;;  %577 = vrot.lane.b32.xlu0 %v539_v55, %s3400_s24  ;;  %s3410_s24 = smov 4   ;;  %s3412_s9 = smov 8  }
 0x1b7   : > { %583 = vrot.lane.b32.xlu0 %v539_v55, %s3398_s10  ;;  %s3408_s10 = smov 32  }
 0x20d   : > { %v548_v56 = vpop.permute.xlu1 %547  ;;  %v542_v57 = vpop.permute.xlu0 %541 }
 0x20e   : > { %v594_v16 = vcombine.low %v542_v57, %v548_v56 }
 0x210   : > { %v601_v25 = vrot.slane %v594_v16, %v2990_v11 }
 0x211   : > { %v551_v58 = vpop.permute.xlu1 %550  ;;  %v545_v59 = vpop.permute.xlu0 %544 }
 0x212   : > { %v586_v14 = vcombine.low %v539_v55, %v545_v59 }
 0x214   : > { %v593_v22 = vrot.slane %v586_v14, %v2990_v11 }
 0x215   : > { %v557_v60 = vpop.permute.xlu1 %556  ;;  %v554_v61 = vpop.permute.xlu0 %553 }
 0x216   : > { %v602_v15 = vcombine.low %v551_v58, %v557_v60  ;;  %v618_v31 = vcombine.low %v593_v22, %v601_v25 }
 0x218   : > { %v609_v23 = vrot.slane %v602_v15, %v2990_v11  ;;  %v625_v38 = vrot.slane %v618_v31, %v2998_v30 }
 0x219   : > { %v563_v62 = vpop.permute.xlu1 %562  ;;  %v560_v63 = vpop.permute.xlu0 %559 }
 0x21a   : > { %v610_v8 = vcombine.low %v554_v61, %v560_v63 }
 0x21c   : > { %v617_v17 = vrot.slane %v610_v8, %v2990_v11 }
 0x21d   : > { %v569_v4 = vpop.permute.xlu1 %568  ;;  %v566_v5 = vpop.permute.xlu0 %565 }
 0x21e   : > { %v635_v24 = vcombine.low %v563_v62, %v569_v4  ;;  %v626_v26 = vcombine.low %v609_v23, %v617_v17 }
 0x220   : > { %v642_v32 = vrot.slane %v635_v24, %v2990_v11  ;;  %v633_v34 = vrot.slane %v626_v26, %v2998_v30 }
 0x221   : > { %v575_v9 = vpop.permute.xlu1 %574  ;;  %v572_v10 = vpop.permute.xlu0 %571 }
 0x222   : > { %v643_v18 = vcombine.low %v566_v5, %v572_v10  ;;  %v634_v40 = vcombine.low %v625_v38, %v633_v34  ;;  %v3050_v34 = vsub.s32 0, %v2987_v7 }
 0x224   : > { %v650_v27 = vrot.slane %v643_v18, %v2990_v11  ;;  %v685_v44 = vsel %vm684_vm2, %v634_v40, 0.0 }
 0x225   : > { %v581_v19 = vpop.permute.xlu1 %580  ;;  %v578_v20 = vpop.permute.xlu0 %577 }
 0x226   : > { %v651_v28 = vcombine.low %v575_v9, %v581_v19  ;;  %v667_v35 = vcombine.low %v642_v32, %v650_v27 }
 0x228   : > { %v658_v36 = vrot.slane %v651_v28, %v2990_v11  ;;  %v674_v41 = vrot.slane %v667_v35, %v2998_v30 }
 0x229   : > { %v584_v29 = vpop.permute.xlu0 %583 }
 0x22a   : > { %v659_v33 = vcombine.low %v578_v20, %v584_v29 }
 0x22c   : > { %v666_v37 = vrot.slane %v659_v33, %v2990_v11 }
 0x22e   : > { %v675_v39 = vcombine.low %v658_v36, %v666_v37 }
 0x230   : > { %v682_v42 = vrot.slane %v675_v39, %v2998_v30 }
 0x232   : > { %v683_v43 = vcombine.low %v674_v41, %v682_v42 }
 0x234   : > { %v686_v46 = vsel %vm684_vm2, %v683_v43, 0.0 }
 0x235   : > { %v687_v48 = vadd.f32 %v686_v46, %v685_v44 }
 0x237   : > { %v688_v49 = vrot.slane %v687_v48, 4 }
 0x239   : > { %v689_v50 = vadd.f32 %v688_v49, %v687_v48 }
 0x23b   : > { %v690_v51 = vrot.slane %v689_v50, 2 }
 0x23d   : > { %v691_v52 = vadd.f32 %v690_v51, %v689_v50 }
 0x23f   : > { %v692_v53 = vrot.slane %v691_v52, 1 }
 0x241   : > { %v693_v54 = vadd.f32 %v692_v53, %v691_v52 }
 0x243   : > { %v694_v55 = vmul.f32 0.00390625, %v693_v54 }
 0x245   : > { %v702_v56 = vrot.slane %v694_v55, %v2990_v11  ;;  %v695_v59 = vcombine.high %v694_v55, %v2695_v0 }
 0x247   : > { %v717_v57 = vrot.slane %v702_v56, %v2998_v30  ;;  %v710_v58 = vcombine.high %v702_v56, %v2695_v0  ;;  %v709_v62 = vrot.slane %v695_v59, %v2990_v11 }
 0x249   : > { %773 = vrot.lane.b32.xlu0 %v717_v57, %s3408_s10  ;;  %v740_v60 = vcombine.high %v717_v57, %v2695_v0  ;;  %v724_v61 = vrot.slane %v710_v58, %v2998_v30  ;;  %v732_v63 = vrot.slane %v709_v62, %v2998_v30  ;;  %s3420_s10 = smov 12   ;;  %v725_v2 = vcombine.high %v709_v62, %v2695_v0 }
 0x24b   : > { %745 = vrot.lane.b32.xlu1 %v740_v60, %s3410_s24  ;;  %v741_v1 = vcombine.high %v724_v61, %v2695_v0  ;;  %s3422_s24 = smov 40   ;;  %v742_v3 = vcombine.high %v732_v63, %v2695_v0  ;;  %v739_v4 = vrot.slane %v725_v2, %v2998_v30 }
 0x24d   : > { %749 = vrot.lane.b32.xlu0 %v724_v61, %s3412_s9  ;;  %s3424_s9 = smov 20   ;;  %v743_v5 = vcombine.high %v739_v4, %v2695_v0 }
 0x24f   : > { %776 = vrot.lane.b32.xlu1 %v740_v60, %s3414_s5  ;;  %s3456_s5 = smov 24  }
 0x251   : > { %757 = vrot.lane.b32.xlu0 %v732_v63, %s3416_s29  ;;  %s3454_s29 = smov 44  }
 0x253   : > { %753 = vrot.lane.b32.xlu1 %v741_v1, %s3420_s10  ;;  %s3450_s10 = smov 28  }
 0x255   : > { %779 = vrot.lane.b32.xlu0 %v724_v61, %s3422_s24  ;;  %s3432_s24 = smov 56  }
 0x257   : > { %761 = vrot.lane.b32.xlu1 %v742_v3, %s3424_s9  ;;  %s3430_s9 = smov 52  }
 0x259   : > { %765 = vrot.lane.b32.xlu0 %v739_v4, %s3456_s5  ;;  %s3514_s5 = smov 20  }
 0x25b   : > { %782 = vrot.lane.b32.xlu1 %v741_v1, %s3454_s29  ;;  %s3513_s29 = smov 40  }
 0x25d   : > { %785 = vrot.lane.b32.xlu0 %v732_v63, %s3452_s20  ;;  %s3512_s20 = smov 12  }
 0x25f   : > { %769 = vrot.lane.b32.xlu1 %v743_v5, %s3450_s10  ;;  %s3511_s10 = smov 16  }
 0x261   : > { %791 = vrot.lane.b32.xlu0 %v739_v4, %s3432_s24  ;;  %s3502_s24 = smov 80  }
 0x263   : > { %788 = vrot.lane.b32.xlu1 %v742_v3, %s3430_s9  ;;  %s3501_s9 = smov 92  }
 0x267   : > { %794 = vrot.lane.b32.xlu1 %v743_v5, %s3428_s27  ;;  %s3500_s27 = smov 88  }
 0x2bb   : > { %v774_v6 = vpop.permute.xlu0 %773 }
 0x2bd   : > { %v746_v8 = vpop.permute.xlu1 %745 }
 0x2be   : > { %v797_v14 = vsel %vm684_vm2, %v717_v57, %v746_v8 }
 0x2bf   : > { %v750_v9 = vpop.permute.xlu0 %749 }
 0x2c0   : > { %v799_v16 = vsel %vm798_vm3, %v797_v14, %v750_v9 }
 0x2c1   : > { %v777_v10 = vpop.permute.xlu1 %776 }
 0x2c3   : > { %v758_v12 = vpop.permute.xlu0 %757 }
 0x2c5   : > { %v754_v13 = vpop.permute.xlu1 %753 }
 0x2c6   : > { %v801_v18 = vsel %vm800_vm4, %v799_v16, %v754_v13 }
 0x2c7   : > { %v780_v15 = vpop.permute.xlu0 %779  ;;  %v803_v20 = vsel %vm802_vm5, %v801_v18, %v758_v12 }
 0x2c9   : > { %v762_v17 = vpop.permute.xlu1 %761 }
 0x2ca   : > { %v805_v22 = vsel %vm804_vm6, %v803_v20, %v762_v17 }
 0x2cb   : > { %v766_v19 = vpop.permute.xlu0 %765 }
 0x2cc   : > { %v807_v23 = vsel %vm806_vm7, %v805_v22, %v766_v19 }
 0x2cd   : > { %v783_v21 = vpop.permute.xlu1 %782 }
 0x2cf   : > { %v786_v25 = vpop.permute.xlu0 %785 }
 0x2d1   : > { %v770_v24 = vpop.permute.xlu1 %769 }
 0x2d2   : > { %v809_v26 = vsel %vm808_vm8, %v807_v23, %v770_v24 }
 0x2d3   : > { %v811_v27 = vsel %vm810_vm9, %v809_v26, %v774_v6  ;;  %v792_v35 = vpop.permute.xlu0 %791 }
 0x2d4   : > { %v813_v28 = vsel %vm812_vm10, %v811_v27, %v777_v10 }
 0x2d5   : > { %v815_v29 = vsel %vm814_vm11, %v813_v28, %v780_v15  ;;  %v789_v31 = vpop.permute.xlu1 %788 }
 0x2d6   : > { %v817_v32 = vsel %vm816_vm12, %v815_v29, %v783_v21 }
 0x2d7   : > { %v819_v33 = vsel %vm818_vm13, %v817_v32, %v786_v25 }
 0x2d8   : > { %v821_v36 = vsel %vm820_vm14, %v819_v33, %v789_v31 }
 0x2d9   : > { %v823_v37 = vsel %vm822_vm15, %v821_v36, %v792_v35  ;;  %v795_v38 = vpop.permute.xlu1 %794 }
 0x2da   : > { %v825_v39 = vsel %vm824_vm0, %v823_v37, %v795_v38 }
 0x2db   : > { %v829_v40 = vrot.slane %v825_v39, %v3050_v34 }
 0x2dd   : > { %v3057_v41 = vsub.f32 %v2968_v47, %v829_v40  ;;  %v3060_v42 = vsub.f32 %v2964_v45, %v829_v40 }
 0x2df   : > { %v832_v43 = vmul.f32 %v3057_v41, %v3057_v41  ;;  %v833_v44 = vmul.f32 %v3060_v42, %v3060_v42 }
 0x2e1   : > { %v834_v46 = vsel %vm251_vm1, %v832_v43, 0.0  ;;  %v835_v48 = vsel %vm251_vm1, %v833_v44, 0.0 }
 0x2e2   : > { %v836_v49 = vadd.f32 %v835_v48, %v834_v46 }
 0x2e4   : > { %v837_v50 = vrot.slane %v836_v49, 4 }
 0x2e6   : > { %v838_v51 = vadd.f32 %v837_v50, %v836_v49 }
 0x2e8   : > { %v839_v52 = vrot.slane %v838_v51, 2 }
 0x2ea   : > { %v840_v53 = vadd.f32 %v839_v52, %v838_v51 }
 0x2ec   : > { %v841_v47 = vrot.slane %v840_v53, 1 }
 0x2ee   : > { %v842_v54 = vadd.f32 %v841_v47, %v840_v53 }
 0x2f0   : > { %847 = vrot.lane.b32.xlu1 %v842_v54, %s3434_s12  ;;  %844 = vrot.lane.b32.xlu0 %v842_v54, %s3436_s23  ;;  %s3503_s12 = smov 84   ;;  %s3504_s23 = smov 72  }
 0x2f4   : > { %853 = vrot.lane.b32.xlu1 %v842_v54, %s3438_s11  ;;  %850 = vrot.lane.b32.xlu0 %v842_v54, %s3440_s21  ;;  %s3505_s11 = smov 76   ;;  %s3506_s21 = smov 68  }
 0x2f8   : > { %859 = vrot.lane.b32.xlu1 %v842_v54, %s3448_s30  ;;  %856 = vrot.lane.b32.xlu0 %v842_v54, %s3446_s6  ;;  %s3509_s6 = smov 8   ;;  %s3510_s30 = smov 36  }
 0x2fc   : > { %865 = vrot.lane.b32.xlu1 %v842_v54, %s3444_s7  ;;  %862 = vrot.lane.b32.xlu0 %v842_v54, %s3442_s28  ;;  %s3507_s28 = smov 32   ;;  %s3508_s7 = smov 4  }
 0x300   : > { %871 = vrot.lane.b32.xlu1 %v842_v54, %s3500_s27  ;;  %868 = vrot.lane.b32.xlu0 %v842_v54, %s3501_s9 }
 0x304   : > { %877 = vrot.lane.b32.xlu1 %v842_v54, %s3502_s24  ;;  %874 = vrot.lane.b32.xlu0 %v842_v54, %s3503_s12 }
 0x308   : > { %883 = vrot.lane.b32.xlu1 %v842_v54, %s3504_s23  ;;  %880 = vrot.lane.b32.xlu0 %v842_v54, %s3505_s11 }
 0x30c   : > { %886 = vrot.lane.b32.xlu0 %v842_v54, %s3506_s21 }
 0x362   : > { %v848_v45 = vpop.permute.xlu1 %847  ;;  %v845_v55 = vpop.permute.xlu0 %844 }
 0x363   : > { %v889_v6 = vcombine.low %v842_v54, %v848_v45 }
 0x365   : > { %v896_v16 = vrot.slane %v889_v6, %v2990_v11  ;;  %v1155_v6 = vld [vmem:[#allocation8 + $0x60] sm:$0xff] }
 0x366   : > { %v854_v56 = vpop.permute.xlu1 %853  ;;  %v851_v57 = vpop.permute.xlu0 %850 }
 0x367   : > { %v897_v4 = vcombine.low %v845_v55, %v851_v57 }
 0x369   : > { %v904_v13 = vrot.slane %v897_v4, %v2990_v11  ;;  %v1154_v4 = vld [vmem:[#allocation8 + $0x58] sm:$0xff] }
 0x36a   : > { %v860_v58 = vpop.permute.xlu1 %859  ;;  %v857_v59 = vpop.permute.xlu0 %856 }
 0x36b   : > { %v905_v5 = vcombine.low %v854_v56, %v860_v58  ;;  %v921_v21 = vcombine.low %v896_v16, %v904_v13 }
 0x36d   : > { %v912_v14 = vrot.slane %v905_v5, %v2990_v11  ;;  %v928_v28 = vrot.slane %v921_v21, %v2998_v30 }
 0x36e   : > { %v866_v60 = vpop.permute.xlu1 %865  ;;  %v863_v61 = vpop.permute.xlu0 %862 }
 0x36f   : > { %v913_v1 = vcombine.low %v857_v59, %v863_v61 }
 0x371   : > { %v920_v8 = vrot.slane %v913_v1, %v2990_v11 }
 0x372   : > { %v872_v62 = vpop.permute.xlu1 %871  ;;  %v869_v63 = vpop.permute.xlu0 %868 }
 0x373   : > { %v938_v15 = vcombine.low %v866_v60, %v872_v62  ;;  %v929_v17 = vcombine.low %v912_v14, %v920_v8  ;;  %v1151_v62 = vld [vmem:[#allocation8 + $0x40] sm:$0xff]  ;;  %v1156_v8 = vld [vmem:[#allocation8 + $0x68] sm:$0xff] }
 0x374   : > { %v1140_v14 = vld [vmem:[#allocation8] sm:$0xff] }
 0x375   : > { %v945_v22 = vrot.slane %v938_v15, %v2990_v11  ;;  %v936_v24 = vrot.slane %v929_v17, %v2998_v30  ;;  %v1141_v15 = vld [vmem:[#allocation8 + $0x8] sm:$0xff] }
 0x376   : > { %v878_v2 = vpop.permute.xlu1 %877  ;;  %v875_v3 = vpop.permute.xlu0 %874  ;;  %v2385_v16 = vpack.c.bf16 %v1141_v15, %v1140_v14  ;;  %v1325_v14 = vld [vmem:[#allocation8 + $0x88] sm:$0xff] }
 0x377   : > { %v946_v9 = vcombine.low %v869_v63, %v875_v3  ;;  %v937_v31 = vcombine.low %v928_v28, %v936_v24  ;;  %v1152_v63 = vld [vmem:[#allocation8 + $0x48] sm:$0xff]  ;;  %v1153_v3 = vld [vmem:[#allocation8 + $0x50] sm:$0xff] }
 0x378   : > { %v2369_v1 = vpack.c.bf16 %v1152_v63, %v1151_v62  ;;  %v2373_v5 = vpack.c.bf16 %v1154_v4, %v1153_v3 }
 0x379   : > { %v953_v18 = vrot.slane %v946_v9, %v2990_v11  ;;  %v987_v36 = vsel %vm684_vm2, %v937_v31, 0.0  ;;  %v2377_v9 = vpack.c.bf16 %v1156_v8, %v1155_v6  ;;  %v1145_v6 = vld [vmem:[#allocation8 + $0x28] sm:$0xff] }
 0x37a   : > { %v884_v10 = vpop.permute.xlu1 %883  ;;  %v881_v12 = vpop.permute.xlu0 %880  ;;  %2370 = vmatprep.subr.bf16.mxu1 %v2369_v1 }
 0x37b   : > { %v954_v19 = vcombine.low %v878_v2, %v884_v10  ;;  %v970_v25 = vcombine.low %v945_v22, %v953_v18  ;;  %2372 = vmatpush3.bf16.msra.mxu1 %v2369_v1  ;;  %v1157_v10 = vld [vmem:[#allocation8 + $0x70] sm:$0xff] }
 0x37c   : > { %2374 = vmatprep.subr.bf16.mxu1 %v2373_v5  ;;  %v1142_v1 = vld [vmem:[#allocation8 + $0x10] sm:$0xff] }
 0x37d   : > { %v961_v26 = vrot.slane %v954_v19, %v2990_v11  ;;  %v977_v32 = vrot.slane %v970_v25, %v2998_v30 }
 0x37e   : > { %v887_v20 = vpop.permute.xlu0 %886 }
 0x37f   : > { %v962_v23 = vcombine.low %v881_v12, %v887_v20  ;;  %2376 = vmatpush3.bf16.msra.mxu1 %v2373_v5  ;;  %v1158_v12 = vld [vmem:[#allocation8 + $0x78] sm:$0xff] }
 0x380   : > { %2378 = vmatprep.subr.bf16.mxu1 %v2377_v9  ;;  %v2381_v13 = vpack.c.bf16 %v1158_v12, %v1157_v10  ;;  %v1147_v10 = vld [vmem:[#allocation8 + $0x38] sm:$0xff] }
 0x381   : > { %v969_v27 = vrot.slane %v962_v23, %v2990_v11 }
 0x383   : > { %v978_v29 = vcombine.low %v961_v26, %v969_v27  ;;  %2380 = vmatpush3.bf16.msra.mxu1 %v2377_v9  ;;  %v1146_v9 = vld [vmem:[#allocation8 + $0x30] sm:$0xff] }
 0x384   : > { %2382 = vmatprep.subr.bf16.mxu1 %v2381_v13  ;;  %v2397_v12 = vpack.c.bf16 %v1147_v10, %v1146_v9 }
 0x385   : > { %v985_v33 = vrot.slane %v978_v29, %v2998_v30 }
 0x387   : > { %v986_v35 = vcombine.low %v977_v32, %v985_v33  ;;  %2384 = vmatpush3.bf16.msra.mxu1 %v2381_v13  ;;  %v1324_v13 = vld [vmem:[#allocation8 + $0x80] sm:$0xff] }
 0x388   : > { %2386 = vmatprep.subr.bf16.mxu1 %v2385_v16  ;;  %v2401_v15 = vpack.c.bf16 %v1325_v14, %v1324_v13 }
 0x389   : > { %v988_v37 = vsel %vm684_vm2, %v986_v35, 0.0 }
 0x38a   : > { %v989_v38 = vadd.f32 %v988_v37, %v987_v36 }
 0x38c   : > { %v990_v39 = vrot.slane %v989_v38, 4 }
 0x38e   : > { %v991_v40 = vadd.f32 %v990_v39, %v989_v38 }
 0x390   : > { %v992_v43 = vrot.slane %v991_v40, 2 }
 0x392   : > { %v993_v44 = vadd.f32 %v992_v43, %v991_v40 }
 0x394   : > { %v994_v46 = vrot.slane %v993_v44, 1 }
 0x396   : > { %v995_v48 = vadd.f32 %v994_v46, %v993_v44 }
 0x398   : > { %v996_v49 = vmul.f32 0.00390625, %v995_v48 }
 0x39a   : > { %v997_v50 = vadd.f32 1e-05, %v996_v49 }
 0x39c   : > { %2528 = vrsqrt.f32 %v997_v50  ;;  %v3141_v50 = vld [vmem:[%s3522_s3] sm:$0xf]  ;;  %s3525_s3 = smov 112  }
 0x3a6   : > { %v2529_v51 = vpop.eup %2528 }
 0x3a7   : > { %v1006_v52 = vrot.slane %v2529_v51, %v2990_v11  ;;  %v999_v54 = vcombine.high %v2529_v51, %v2695_v0 }
 0x3a9   : > { %v1021_v53 = vrot.slane %v1006_v52, %v2998_v30  ;;  %v1014_v47 = vcombine.high %v1006_v52, %v2695_v0  ;;  %v1013_v56 = vrot.slane %v999_v54, %v2990_v11  ;;  %v1130_v52 = vsub.s32 1, %v2987_v7 }
 0x3aa   : > { %v1125_v54 = vrot.slane %v3141_v50, %v3050_v34 }
 0x3ab   : > { %1077 = vrot.lane.b32.xlu0 %v1021_v53, %s3507_s28  ;;  %v1044_v45 = vcombine.high %v1021_v53, %v2695_v0  ;;  %v1028_v55 = vrot.slane %v1014_v47, %v2998_v30  ;;  %v1036_v57 = vrot.slane %v1013_v56, %v2998_v30  ;;  %v1029_v59 = vcombine.high %v1013_v56, %v2695_v0 }
 0x3ad   : > { %1049 = vrot.lane.b32.xlu1 %v1044_v45, %s3508_s7  ;;  %v1045_v58 = vcombine.high %v1028_v55, %v2695_v0  ;;  %v1046_v60 = vcombine.high %v1036_v57, %v2695_v0  ;;  %v1043_v61 = vrot.slane %v1029_v59, %v2998_v30 }
 0x3af   : > { %1053 = vrot.lane.b32.xlu0 %v1028_v55, %s3509_s6  ;;  %v1047_v2 = vcombine.high %v1043_v61, %v2695_v0 }
 0x3b1   : > { %1080 = vrot.lane.b32.xlu1 %v1044_v45, %s3510_s30 }
 0x3b3   : > { %1061 = vrot.lane.b32.xlu0 %v1036_v57, %s3511_s10 }
 0x3b5   : > { %1057 = vrot.lane.b32.xlu1 %v1045_v58, %s3512_s20 }
 0x3b7   : > { %1083 = vrot.lane.b32.xlu0 %v1028_v55, %s3513_s29  ;;  %v1131_v55 = vrot.slane %v3141_v50, %v1130_v52 }
 0x3b9   : > { %1065 = vrot.lane.b32.xlu1 %v1046_v60, %s3514_s5 }
 0x3bb   : > { %1069 = vrot.lane.b32.xlu0 %v1043_v61, %s3515_s0 }
 0x3bd   : > { %1086 = vrot.lane.b32.xlu1 %v1045_v58, %s3516_s1 }
 0x3bf   : > { %1089 = vrot.lane.b32.xlu0 %v1036_v57, %s3517_s2 }
 0x3c1   : > { %1073 = vrot.lane.b32.xlu1 %v1047_v2, %s3518_s14 }
 0x3c3   : > { %1095 = vrot.lane.b32.xlu0 %v1043_v61, %s3519_s17 }
 0x3c5   : > { %1092 = vrot.lane.b32.xlu1 %v1046_v60, %s3520_s16 }
 0x3c9   : > { %1098 = vrot.lane.b32.xlu1 %v1047_v2, %s3521_s26  ;;  %v1143_v2 = vld [vmem:[#allocation8 + $0x18] sm:$0xff] }
 0x3ca   : > { %v2389_v5 = vpack.c.bf16 %v1143_v2, %v1142_v1 }
 0x41d   : > { %v1078_v17 = vpop.permute.xlu0 %1077 }
 0x41f   : > { %v1050_v18 = vpop.permute.xlu1 %1049 }
 0x420   : > { %v1101_v23 = vsel %vm684_vm2, %v1021_v53, %v1050_v18  ;;  %v1327_v18 = vld [vmem:[#allocation8 + $0x98] sm:$0xff] }
 0x421   : > { %v1054_v19 = vpop.permute.xlu0 %1053 }
 0x422   : > { %v1102_v25 = vsel %vm798_vm3, %v1101_v23, %v1054_v19 }
 0x423   : > { %v1081_v20 = vpop.permute.xlu1 %1080 }
 0x425   : > { %v1062_v21 = vpop.permute.xlu0 %1061 }
 0x427   : > { %v1058_v22 = vpop.permute.xlu1 %1057 }
 0x428   : > { %v1103_v27 = vsel %vm800_vm4, %v1102_v25, %v1058_v22  ;;  %v1331_v25 = vld [vmem:[#allocation8 + $0xb8] sm:$0xff] }
 0x429   : > { %v1084_v24 = vpop.permute.xlu0 %1083  ;;  %v1104_v29 = vsel %vm802_vm5, %v1103_v27, %v1062_v21  ;;  %v1329_v21 = vld [vmem:[#allocation8 + $0xa8] sm:$0xff] }
 0x42b   : > { %v1066_v26 = vpop.permute.xlu1 %1065 }
 0x42c   : > { %v1105_v32 = vsel %vm804_vm6, %v1104_v29, %v1066_v26 }
 0x42d   : > { %v1070_v28 = vpop.permute.xlu0 %1069 }
 0x42e   : > { %v1106_v33 = vsel %vm806_vm7, %v1105_v32, %v1070_v28 }
 0x42f   : > { %v1087_v31 = vpop.permute.xlu1 %1086 }
 0x431   : > { %v1090_v36 = vpop.permute.xlu0 %1089 }
 0x433   : > { %v1074_v35 = vpop.permute.xlu1 %1073 }
 0x434   : > { %v1107_v37 = vsel %vm808_vm8, %v1106_v33, %v1074_v35 }
 0x435   : > { %v1108_v38 = vsel %vm810_vm9, %v1107_v37, %v1078_v17  ;;  %v1096_v48 = vpop.permute.xlu0 %1095  ;;  %v1326_v17 = vld [vmem:[#allocation8 + $0x90] sm:$0xff] }
 0x436   : > { %v1109_v39 = vsel %vm812_vm10, %v1108_v38, %v1081_v20  ;;  %v2405_v19 = vpack.c.bf16 %v1327_v18, %v1326_v17  ;;  %v1328_v20 = vld [vmem:[#allocation8 + $0xa0] sm:$0xff] }
 0x437   : > { %v1110_v40 = vsel %vm814_vm11, %v1109_v39, %v1084_v24  ;;  %v1093_v43 = vpop.permute.xlu1 %1092  ;;  %v2409_v23 = vpack.c.bf16 %v1329_v21, %v1328_v20  ;;  %v1330_v24 = vld [vmem:[#allocation8 + $0xb0] sm:$0xff] }
 0x438   : > { %v1111_v44 = vsel %vm816_vm12, %v1110_v40, %v1087_v31  ;;  %v2413_v26 = vpack.c.bf16 %v1331_v25, %v1330_v24 }
 0x439   : > { %v1112_v46 = vsel %vm818_vm13, %v1111_v44, %v1090_v36 }
 0x43a   : > { %v1113_v49 = vsel %vm820_vm14, %v1112_v46, %v1093_v43 }
 0x43b   : > { %v1114_v51 = vsel %vm822_vm15, %v1113_v49, %v1096_v48  ;;  %v1099_v53 = vpop.permute.xlu1 %1098 }
 0x43c   : > { %v1115_v47 = vsel %vm824_vm0, %v1114_v51, %v1099_v53 }
 0x43d   : > { %v1119_v45 = vrot.slane %v1115_v47, %v3050_v34 }
 0x43f   : > { %v1120_v56 = vmul.f32 %v1119_v45, %v3057_v41  ;;  %v1121_v57 = vmul.f32 %v1119_v45, %v3060_v42  ;;  %v1144_v41 = vld [vmem:[#allocation8 + $0x20] sm:$0xff] }
 0x440   : > { %v2393_v8 = vpack.c.bf16 %v1145_v6, %v1144_v41 }
 0x441   : > { %v1126_v58 = vmul.f32 %v1125_v54, %v1120_v56  ;;  %v1127_v59 = vmul.f32 %v1125_v54, %v1121_v57 }
 0x443   : > { %v1132_v60 = vadd.f32 %v1131_v55, %v1126_v58  ;;  %v1133_v61 = vadd.f32 %v1131_v55, %v1127_v59 }
 0x445   : > { %v1134_v62 = vmax.f32 %v1132_v60, 0.0  ;;  %v1135_v63 = vmax.f32 %v1133_v61, 0.0 }
 0x447   : > { %1136 = vst.msk [vmem:[#allocation2 + $0x1] sm:$0xff] %vm251_vm1, %v1134_v62  ;;  %1137 = vst.msk [vmem:[#allocation2 + $0x9] sm:$0xff] %vm251_vm1, %v1135_v63 }
 0x44e   : > { %v1148_v3 = vld [vmem:[#allocation2 + $0x1] sm:$0xff]  ;;  %v1149_v4 = vld [vmem:[#allocation2 + $0x9] sm:$0xff] }
 0x44f   : > { %2280 = vmatprep.mubr.msk.f32.mxu1 %vm251_vm1, %v1148_v3  ;;  %v1138_v42 = vld [vmem:[#allocation2] sm:$0xff]  ;;  %v1322_v27 = vld [vmem:[#allocation2 + $0xa] sm:$0xff] }
 0x450   : > { %2281 = vmatmul.mubr.msk.f32.vlgmr.msra.gmra.mrb[0].mxu1 %vm251_vm1, %v1149_v4  ;;  %v1321_v22 = vld [vmem:[#allocation2 + $0x2] sm:$0xff] }
 0x451   : > { %2388 = vmatpush3.bf16.msra.mxu1 %v2385_v16  ;;  %2299 = vmatprep.mubr.msk.f32.mxu1 %vm251_vm1, %v1138_v42  ;;  %v1139_v16 = vld [vmem:[#allocation2 + $0x8] sm:$0xff] }
 0x452   : > { %2390 = vmatprep.subr.bf16.mxu1 %v2389_v5 }
 0x455   : > { %2392 = vmatpush3.bf16.msra.mxu1 %v2389_v5 }
 0x456   : > { %2394 = vmatprep.subr.bf16.mxu1 %v2393_v8 }
 0x459   : > { %2396 = vmatpush3.bf16.msra.mxu1 %v2393_v8 }
 0x45a   : > { %2398 = vmatprep.subr.bf16.mxu1 %v2397_v12 }
 0x45d   : > { %2400 = vmatpush3.bf16.msra.mxu1 %v2397_v12 }
 0x45e   : > { %2402 = vmatprep.subr.bf16.mxu1 %v2401_v15 }
 0x460   : > { %2300 = vmatmul.mubr.msk.f32.vlgmr.msra.gmra.mrb[0].mxu1 %vm251_vm1, %v1139_v16 }
 0x461   : > { %2404 = vmatpush3.bf16.msra.mxu1 %v2401_v15  ;;  %2318 = vmatprep.mubr.msk.f32.mxu1 %vm251_vm1, %v1321_v22 }
 0x462   : > { %2406 = vmatprep.subr.bf16.mxu1 %v2405_v19 }
 0x465   : > { %2408 = vmatpush3.bf16.msra.mxu1 %v2405_v19 }
 0x466   : > { %2410 = vmatprep.subr.bf16.mxu1 %v2409_v23 }
 0x469   : > { %2412 = vmatpush3.bf16.msra.mxu1 %v2409_v23 }
 0x46a   : > { %2414 = vmatprep.subr.bf16.mxu1 %v2413_v26 }
 0x46d   : > { %2416 = vmatpush3.bf16.msra.mxu1 %v2413_v26 }
 0x470   : > { %2319 = vmatmul.mubr.msk.f32.vlgmr.msra.gmra.mrb[0].mxu1 %vm251_vm1, %v1322_v27 }
 0x543   : > { %v3160_v28 = vpop.f32.mrb[0].mxu1 }
 0x544   : > { %v1416_v29 = vsel %vm251_vm1, %v3160_v28, 0.0  ;;  %v3164_v31 = vpop.f32.mrb[1].mxu1 }
 0x545   : > { %v1415_v32 = vsel %vm251_vm1, %v3164_v31, 0.0 }
 0x546   : > { %v1417_v33 = vadd.f32 %v1416_v29, %v1415_v32 }
 0x548   : > { %v1418_v35 = vrot.slane %v1417_v33, 4 }
 0x54a   : > { %v1419_v36 = vadd.f32 %v1418_v35, %v1417_v33 }
 0x54c   : > { %v1420_v37 = vrot.slane %v1419_v36, 2 }
 0x54e   : > { %v1421_v38 = vadd.f32 %v1420_v37, %v1419_v36 }
 0x550   : > { %v1422_v39 = vrot.slane %v1421_v38, 1 }
 0x552   : > { %v1423_v40 = vadd.f32 %v1422_v39, %v1421_v38 }
 0x554   : > { %1428 = vrot.lane.b32.xlu1 %v1423_v40, %s3523_s18  ;;  %1425 = vrot.lane.b32.xlu0 %v1423_v40, %s3524_s22 }
 0x558   : > { %1434 = vrot.lane.b32.xlu1 %v1423_v40, %s3525_s3  ;;  %1431 = vrot.lane.b32.xlu0 %v1423_v40, %s3526_s15 }
 0x55c   : > { %1440 = vrot.lane.b32.xlu1 %v1423_v40, %s3527_s4  ;;  %1437 = vrot.lane.b32.xlu0 %v1423_v40, %s3528_s13 }
 0x560   : > { %1446 = vrot.lane.b32.xlu1 %v1423_v40, %s3529_s8  ;;  %1443 = vrot.lane.b32.xlu0 %v1423_v40, %s3530_s25 }
 0x564   : > { %1452 = vrot.lane.b32.xlu1 %v1423_v40, %s3500_s27  ;;  %1449 = vrot.lane.b32.xlu0 %v1423_v40, %s3501_s9 }
 0x568   : > { %1458 = vrot.lane.b32.xlu1 %v1423_v40, %s3502_s24  ;;  %1455 = vrot.lane.b32.xlu0 %v1423_v40, %s3503_s12 }
 0x56c   : > { %1464 = vrot.lane.b32.xlu1 %v1423_v40, %s3504_s23  ;;  %1461 = vrot.lane.b32.xlu0 %v1423_v40, %s3505_s11 }
 0x570   : > { %1467 = vrot.lane.b32.xlu0 %v1423_v40, %s3506_s21 }
 0x5c6   : > { %v1429_v43 = vpop.permute.xlu1 %1428  ;;  %v1426_v44 = vpop.permute.xlu0 %1425 }
 0x5c7   : > { %v1470_v59 = vcombine.low %v1423_v40, %v1429_v43 }
 0x5c9   : > { %v1477_v4 = vrot.slane %v1470_v59, %v2990_v11 }
 0x5ca   : > { %v1435_v46 = vpop.permute.xlu1 %1434  ;;  %v1432_v48 = vpop.permute.xlu0 %1431 }
 0x5cb   : > { %v1478_v57 = vcombine.low %v1426_v44, %v1432_v48 }
 0x5cd   : > { %v1485_v1 = vrot.slane %v1478_v57, %v2990_v11 }
 0x5ce   : > { %v1441_v49 = vpop.permute.xlu1 %1440  ;;  %v1438_v51 = vpop.permute.xlu0 %1437 }
 0x5cf   : > { %v1486_v58 = vcombine.low %v1435_v46, %v1441_v49  ;;  %v1502_v8 = vcombine.low %v1477_v4, %v1485_v1 }
 0x5d1   : > { %v1493_v2 = vrot.slane %v1486_v58, %v2990_v11  ;;  %v1509_v17 = vrot.slane %v1502_v8, %v2998_v30 }
 0x5d2   : > { %v1447_v52 = vpop.permute.xlu1 %1446  ;;  %v1444_v53 = vpop.permute.xlu0 %1443 }
 0x5d3   : > { %v1494_v45 = vcombine.low %v1438_v51, %v1444_v53 }
 0x5d5   : > { %v1501_v60 = vrot.slane %v1494_v45, %v2990_v11 }
 0x5d6   : > { %v1453_v47 = vpop.permute.xlu1 %1452  ;;  %v1450_v54 = vpop.permute.xlu0 %1449 }
 0x5d7   : > { %v1519_v3 = vcombine.low %v1447_v52, %v1453_v47  ;;  %v1510_v5 = vcombine.low %v1493_v2, %v1501_v60 }
 0x5d9   : > { %v1526_v9 = vrot.slane %v1519_v3, %v2990_v11  ;;  %v1517_v12 = vrot.slane %v1510_v5, %v2998_v30 }
 0x5da   : > { %v1459_v55 = vpop.permute.xlu1 %1458  ;;  %v1456_v56 = vpop.permute.xlu0 %1455 }
 0x5db   : > { %v1527_v61 = vcombine.low %v1450_v54, %v1456_v56  ;;  %v1518_v19 = vcombine.low %v1509_v17, %v1517_v12 }
 0x5dd   : > { %v1534_v41 = vrot.slane %v1527_v61, %v2990_v11  ;;  %v1568_v22 = vsel %vm684_vm2, %v1518_v19, 0.0 }
 0x5de   : > { %v1465_v62 = vpop.permute.xlu1 %1464  ;;  %v1462_v63 = vpop.permute.xlu0 %1461 }
 0x5df   : > { %v1535_v6 = vcombine.low %v1459_v55, %v1465_v62  ;;  %v1551_v13 = vcombine.low %v1526_v9, %v1534_v41 }
 0x5e1   : > { %v1542_v14 = vrot.slane %v1535_v6, %v2990_v11  ;;  %v1558_v16 = vrot.slane %v1551_v13, %v2998_v30 }
 0x5e2   : > { %v1468_v42 = vpop.permute.xlu0 %1467 }
 0x5e3   : > { %v1543_v10 = vcombine.low %v1462_v63, %v1468_v42 }
 0x5e5   : > { %v1550_v15 = vrot.slane %v1543_v10, %v2990_v11 }
 0x5e7   : > { %v1559_v18 = vcombine.low %v1542_v14, %v1550_v15 }
 0x5e9   : > { %v1566_v20 = vrot.slane %v1559_v18, %v2998_v30 }
 0x5eb   : > { %v1567_v21 = vcombine.low %v1558_v16, %v1566_v20 }
 0x5ed   : > { %v1569_v23 = vsel %vm684_vm2, %v1567_v21, 0.0 }
 0x5ee   : > { %v1570_v24 = vadd.f32 %v1569_v23, %v1568_v22 }
 0x5f0   : > { %v1571_v25 = vrot.slane %v1570_v24, 4 }
 0x5f2   : > { %v1572_v26 = vadd.f32 %v1571_v25, %v1570_v24 }
 0x5f4   : > { %v1573_v27 = vrot.slane %v1572_v26, 2 }
 0x5f6   : > { %v1574_v29 = vadd.f32 %v1573_v27, %v1572_v26 }
 0x5f8   : > { %v1575_v32 = vrot.slane %v1574_v29, 1 }
 0x5fa   : > { %v1576_v33 = vadd.f32 %v1575_v32, %v1574_v29 }
 0x5fc   : > { %v1577_v35 = vmul.f32 0.00390625, %v1576_v33 }
 0x5fe   : > { %v1585_v36 = vrot.slane %v1577_v35, %v2990_v11  ;;  %v1578_v39 = vcombine.high %v1577_v35, %v2695_v0 }
 0x600   : > { %v1600_v37 = vrot.slane %v1585_v36, %v2998_v30  ;;  %v1593_v38 = vcombine.high %v1585_v36, %v2695_v0  ;;  %v1592_v44 = vrot.slane %v1578_v39, %v2990_v11 }
 0x602   : > { %1656 = vrot.lane.b32.xlu0 %v1600_v37, %s3507_s28  ;;  %v1623_v40 = vcombine.high %v1600_v37, %v2695_v0  ;;  %v1607_v43 = vrot.slane %v1593_v38, %v2998_v30  ;;  %v1615_v46 = vrot.slane %v1592_v44, %v2998_v30  ;;  %v1608_v49 = vcombine.high %v1592_v44, %v2695_v0 }
 0x604   : > { %1628 = vrot.lane.b32.xlu1 %v1623_v40, %s3508_s7  ;;  %v1624_v48 = vcombine.high %v1607_v43, %v2695_v0  ;;  %v1625_v51 = vcombine.high %v1615_v46, %v2695_v0  ;;  %v1622_v52 = vrot.slane %v1608_v49, %v2998_v30 }
 0x606   : > { %1632 = vrot.lane.b32.xlu0 %v1607_v43, %s3509_s6  ;;  %v1626_v53 = vcombine.high %v1622_v52, %v2695_v0 }
 0x608   : > { %1659 = vrot.lane.b32.xlu1 %v1623_v40, %s3510_s30 }
 0x60a   : > { %1640 = vrot.lane.b32.xlu0 %v1615_v46, %s3511_s10 }
 0x60c   : > { %1636 = vrot.lane.b32.xlu1 %v1624_v48, %s3512_s20 }
 0x60e   : > { %1662 = vrot.lane.b32.xlu0 %v1607_v43, %s3513_s29 }
 0x610   : > { %1644 = vrot.lane.b32.xlu1 %v1625_v51, %s3514_s5 }
 0x612   : > { %1648 = vrot.lane.b32.xlu0 %v1622_v52, %s3515_s0 }
 0x614   : > { %1665 = vrot.lane.b32.xlu1 %v1624_v48, %s3516_s1 }
 0x616   : > { %1668 = vrot.lane.b32.xlu0 %v1615_v46, %s3517_s2 }
 0x618   : > { %1652 = vrot.lane.b32.xlu1 %v1626_v53, %s3518_s14 }
 0x61a   : > { %1674 = vrot.lane.b32.xlu0 %v1622_v52, %s3519_s17 }
 0x61c   : > { %1671 = vrot.lane.b32.xlu1 %v1625_v51, %s3520_s16 }
 0x620   : > { %1677 = vrot.lane.b32.xlu1 %v1626_v53, %s3521_s26 }
 0x674   : > { %v1657_v47 = vpop.permute.xlu0 %1656 }
 0x676   : > { %v1629_v54 = vpop.permute.xlu1 %1628 }
 0x677   : > { %v1680_v58 = vsel %vm684_vm2, %v1600_v37, %v1629_v54 }
 0x678   : > { %v1633_v45 = vpop.permute.xlu0 %1632 }
 0x679   : > { %v1681_v60 = vsel %vm798_vm3, %v1680_v58, %v1633_v45 }
 0x67a   : > { %v1660_v55 = vpop.permute.xlu1 %1659 }
 0x67c   : > { %v1641_v56 = vpop.permute.xlu0 %1640 }
 0x67e   : > { %v1637_v57 = vpop.permute.xlu1 %1636 }
 0x67f   : > { %v1682_v62 = vsel %vm800_vm4, %v1681_v60, %v1637_v57 }
 0x680   : > { %v1663_v59 = vpop.permute.xlu0 %1662  ;;  %v1683_v1 = vsel %vm802_vm5, %v1682_v62, %v1641_v56 }
 0x682   : > { %v1645_v61 = vpop.permute.xlu1 %1644 }
 0x683   : > { %v1684_v3 = vsel %vm804_vm6, %v1683_v1, %v1645_v61 }
 0x684   : > { %v1649_v63 = vpop.permute.xlu0 %1648 }
 0x685   : > { %v1685_v4 = vsel %vm806_vm7, %v1684_v3, %v1649_v63 }
 0x686   : > { %v1666_v2 = vpop.permute.xlu1 %1665 }
 0x688   : > { %v1669_v41 = vpop.permute.xlu0 %1668 }
 0x68a   : > { %v1653_v5 = vpop.permute.xlu1 %1652 }
 0x68b   : > { %v1686_v6 = vsel %vm808_vm8, %v1685_v4, %v1653_v5 }
 0x68c   : > { %v1687_v42 = vsel %vm810_vm9, %v1686_v6, %v1657_v47  ;;  %v1675_v14 = vpop.permute.xlu0 %1674 }
 0x68d   : > { %v1688_v8 = vsel %vm812_vm10, %v1687_v42, %v1660_v55 }
 0x68e   : > { %v1689_v9 = vsel %vm814_vm11, %v1688_v8, %v1663_v59  ;;  %v1672_v10 = vpop.permute.xlu1 %1671 }
 0x68f   : > { %v1690_v12 = vsel %vm816_vm12, %v1689_v9, %v1666_v2 }
 0x690   : > { %v1691_v13 = vsel %vm818_vm13, %v1690_v12, %v1669_v41 }
 0x691   : > { %v1692_v15 = vsel %vm820_vm14, %v1691_v13, %v1672_v10 }
 0x692   : > { %v1693_v17 = vsel %vm822_vm15, %v1692_v15, %v1675_v14  ;;  %v1678_v18 = vpop.permute.xlu1 %1677 }
 0x693   : > { %v1694_v19 = vsel %vm824_vm0, %v1693_v17, %v1678_v18 }
 0x694   : > { %v1698_v16 = vrot.slane %v1694_v19, %v3050_v34 }
 0x696   : > { %v3242_v20 = vsub.f32 %v3164_v31, %v1698_v16  ;;  %v3245_v21 = vsub.f32 %v3160_v28, %v1698_v16 }
 0x698   : > { %v1701_v22 = vmul.f32 %v3242_v20, %v3242_v20  ;;  %v1702_v23 = vmul.f32 %v3245_v21, %v3245_v21 }
 0x69a   : > { %v1703_v24 = vsel %vm251_vm1, %v1701_v22, 0.0  ;;  %v1704_v25 = vsel %vm251_vm1, %v1702_v23, 0.0 }
 0x69b   : > { %v1705_v26 = vadd.f32 %v1704_v25, %v1703_v24 }
 0x69d   : > { %v1706_v27 = vrot.slane %v1705_v26, 4 }
 0x69f   : > { %v1707_v29 = vadd.f32 %v1706_v27, %v1705_v26 }
 0x6a1   : > { %v1708_v32 = vrot.slane %v1707_v29, 2 }
 0x6a3   : > { %v1709_v33 = vadd.f32 %v1708_v32, %v1707_v29 }
 0x6a5   : > { %v1710_v31 = vrot.slane %v1709_v33, 1 }
 0x6a7   : > { %v1711_v35 = vadd.f32 %v1710_v31, %v1709_v33 }
 0x6a9   : > { %1716 = vrot.lane.b32.xlu1 %v1711_v35, %s3523_s18  ;;  %1713 = vrot.lane.b32.xlu0 %v1711_v35, %s3524_s22 }
 0x6ad   : > { %1722 = vrot.lane.b32.xlu1 %v1711_v35, %s3525_s3  ;;  %1719 = vrot.lane.b32.xlu0 %v1711_v35, %s3526_s15  ;;  %s3533_s3 = sld [smem:[#allocation19_spill]] }
 0x6b1   : > { %1728 = vrot.lane.b32.xlu1 %v1711_v35, %s3527_s4  ;;  %1725 = vrot.lane.b32.xlu0 %v1711_v35, %s3528_s13  ;;  %s3535_s13 = sld [smem:[#allocation27_spill]] }
 0x6b3   : > { %p3536_p0 = scmp.ne.s32.totalorder %s3533_s3, 0 }
 0x6b5   : > { %1734 = vrot.lane.b32.xlu1 %v1711_v35, %s3529_s8  ;;  %1731 = vrot.lane.b32.xlu0 %v1711_v35, %s3530_s25 }
 0x6b9   : > { %1740 = vrot.lane.b32.xlu1 %v1711_v35, %s3500_s27  ;;  %1737 = vrot.lane.b32.xlu0 %v1711_v35, %s3501_s9 }
 0x6bd   : > { %1746 = vrot.lane.b32.xlu1 %v1711_v35, %s3502_s24  ;;  %1743 = vrot.lane.b32.xlu0 %v1711_v35, %s3503_s12 }
 0x6c1   : > { %1752 = vrot.lane.b32.xlu1 %v1711_v35, %s3504_s23  ;;  %1749 = vrot.lane.b32.xlu0 %v1711_v35, %s3505_s11 }
 0x6c5   : > { %1755 = vrot.lane.b32.xlu0 %v1711_v35, %s3506_s21 }
 0x71b   : > { %v1717_v28 = vpop.permute.xlu1 %1716  ;;  %v1714_v36 = vpop.permute.xlu0 %1713 }
 0x71c   : > { %v1758_v54 = vcombine.low %v1711_v35, %v1717_v28 }
 0x71e   : > { %v1765_v61 = vrot.slane %v1758_v54, %v2990_v11 }
 0x71f   : > { %v1723_v37 = vpop.permute.xlu1 %1722  ;;  %v1720_v38 = vpop.permute.xlu0 %1719 }
 0x720   : > { %v1766_v53 = vcombine.low %v1714_v36, %v1720_v38 }
 0x722   : > { %v1773_v58 = vrot.slane %v1766_v53, %v2990_v11 }
 0x723   : > { %v1729_v39 = vpop.permute.xlu1 %1728  ;;  %v1726_v40 = vpop.permute.xlu0 %1725 }
 0x724   : > { %v1774_v47 = vcombine.low %v1723_v37, %v1729_v39  ;;  %v1790_v3 = vcombine.low %v1765_v61, %v1773_v58 }
 0x726   : > { %v1781_v59 = vrot.slane %v1774_v47, %v2990_v11  ;;  %v1797_v9 = vrot.slane %v1790_v3, %v2998_v30 }
 0x727   : > { %v1735_v43 = vpop.permute.xlu1 %1734  ;;  %v1732_v44 = vpop.permute.xlu0 %1731 }
 0x728   : > { %v1782_v49 = vcombine.low %v1726_v40, %v1732_v44 }
 0x72a   : > { %v1789_v45 = vrot.slane %v1782_v49, %v2990_v11 }
 0x72b   : > { %v1741_v46 = vpop.permute.xlu1 %1740  ;;  %v1738_v48 = vpop.permute.xlu0 %1737 }
 0x72c   : > { %v1807_v60 = vcombine.low %v1735_v43, %v1741_v46  ;;  %v1798_v62 = vcombine.low %v1781_v59, %v1789_v45 }
 0x72e   : > { %v1814_v4 = vrot.slane %v1807_v60, %v2990_v11  ;;  %v1805_v41 = vrot.slane %v1798_v62, %v2998_v30 }
 0x72f   : > { %v1747_v51 = vpop.permute.xlu1 %1746  ;;  %v1744_v52 = vpop.permute.xlu0 %1743 }
 0x730   : > { %v1815_v55 = vcombine.low %v1738_v48, %v1744_v52  ;;  %v1806_v12 = vcombine.low %v1797_v9, %v1805_v41 }
 0x732   : > { %v1822_v63 = vrot.slane %v1815_v55, %v2990_v11  ;;  %v1856_v17 = vsel %vm684_vm2, %v1806_v12, 0.0 }
 0x733   : > { %v1753_v56 = vpop.permute.xlu1 %1752  ;;  %v1750_v57 = vpop.permute.xlu0 %1749 }
 0x734   : > { %v1823_v1 = vcombine.low %v1747_v51, %v1753_v56  ;;  %v1839_v6 = vcombine.low %v1814_v4, %v1822_v63 }
 0x736   : > { %v1830_v42 = vrot.slane %v1823_v1, %v2990_v11  ;;  %v1846_v13 = vrot.slane %v1839_v6, %v2998_v30  ;;  %v1993_v6 = vsub.s32 2, %v2987_v7 }
 0x737   : > { %v1756_v2 = vpop.permute.xlu0 %1755 }
 0x738   : > { %v1831_v5 = vcombine.low %v1750_v57, %v1756_v2 }
 0x73a   : > { %v1838_v8 = vrot.slane %v1831_v5, %v2990_v11 }
 0x73c   : > { %v1847_v10 = vcombine.low %v1830_v42, %v1838_v8 }
 0x73e   : > { %v1854_v14 = vrot.slane %v1847_v10, %v2998_v30  ;;  %v1999_v10 = vsub.s32 3, %v2987_v7 }
 0x740   : > { %v1855_v15 = vcombine.low %v1846_v13, %v1854_v14  ;;  %v1994_v14 = vrot.slane %v3141_v50, %v1993_v6 }
 0x742   : > { %v1857_v18 = vsel %vm684_vm2, %v1855_v15, 0.0 }
 0x743   : > { %v1858_v19 = vadd.f32 %v1857_v18, %v1856_v17  ;;  %v2000_v17 = vrot.slane %v3141_v50, %v1999_v10 }
 0x745   : > { %v1859_v16 = vrot.slane %v1858_v19, 4 }
 0x747   : > { %v1860_v22 = vadd.f32 %v1859_v16, %v1858_v19 }
 0x749   : > { %v1861_v23 = vrot.slane %v1860_v22, 2 }
 0x74b   : > { %v1862_v24 = vadd.f32 %v1861_v23, %v1860_v22 }
 0x74d   : > { %v1863_v25 = vrot.slane %v1862_v24, 1 }
 0x74f   : > { %v1864_v26 = vadd.f32 %v1863_v25, %v1862_v24 }
 0x751   : > { %v1865_v27 = vmul.f32 0.00390625, %v1864_v26 }
 0x753   : > { %v1866_v29 = vadd.f32 1e-05, %v1865_v27 }
 0x755   : > { %2530 = vrsqrt.f32 %v1866_v29 }
 0x75f   : > { %v2531_v32 = vpop.eup %2530 }
 0x760   : > { %v1875_v33 = vrot.slane %v2531_v32, %v2990_v11  ;;  %v1868_v28 = vcombine.high %v2531_v32, %v2695_v0 }
 0x762   : > { %v1890_v31 = vrot.slane %v1875_v33, %v2998_v30  ;;  %v1883_v35 = vcombine.high %v1875_v33, %v2695_v0  ;;  %v1882_v38 = vrot.slane %v1868_v28, %v2990_v11 }
 0x764   : > { %1946 = vrot.lane.b32.xlu0 %v1890_v31, %s3507_s28  ;;  %v1913_v36 = vcombine.high %v1890_v31, %v2695_v0  ;;  %v1897_v37 = vrot.slane %v1883_v35, %v2998_v30  ;;  %v1905_v39 = vrot.slane %v1882_v38, %v2998_v30  ;;  %v1898_v43 = vcombine.high %v1882_v38, %v2695_v0 }
 0x766   : > { %1918 = vrot.lane.b32.xlu1 %v1913_v36, %s3508_s7  ;;  %v1914_v40 = vcombine.high %v1897_v37, %v2695_v0  ;;  %v1915_v44 = vcombine.high %v1905_v39, %v2695_v0  ;;  %v1912_v11 = vrot.slane %v1898_v43, %v2998_v30 }
 0x768   : > { %1922 = vrot.lane.b32.xlu0 %v1897_v37, %s3509_s6  ;;  %v1916_v46 = vcombine.high %v1912_v11, %v2695_v0 }
 0x76a   : > { %1949 = vrot.lane.b32.xlu1 %v1913_v36, %s3510_s30 }
 0x76c   : > { %1930 = vrot.lane.b32.xlu0 %v1905_v39, %s3511_s10  ;;  %s2728_s10 = smov [#allocation9]  }
 0x76d   : > { %s2622_s25 = sshll.u32 %s2728_s10, 4  ;;  %s2623_s25 = int_to_ptr.vmem [resolvable:$false] %s2622_s25 }
 0x76e   : > { %1926 = vrot.lane.b32.xlu1 %v1914_v40, %s3512_s20  ;;  %s2624_s21 = scalar_lea.vmem %s2623_s25, 512 }
 0x770   : > { %1952 = vrot.lane.b32.xlu0 %v1897_v37, %s3513_s29 }
 0x772   : > { %1934 = vrot.lane.b32.xlu1 %v1915_v44, %s3514_s5 }
 0x774   : > { %1938 = vrot.lane.b32.xlu0 %v1912_v11, %s3515_s0  ;;  %s3531_s0 = sld [smem:[#allocation22_spill]] }
 0x776   : > { %1955 = vrot.lane.b32.xlu1 %v1914_v40, %s3516_s1  ;;  %s3532_s1 = sld [smem:[#allocation21_spill]] }
 0x778   : > { %1958 = vrot.lane.b32.xlu0 %v1905_v39, %s3517_s2  ;;  %s2146_s2 = sshll.u32 %s2776_s19, 8 }
 0x77a   : > { %1942 = vrot.lane.b32.xlu1 %v1916_v46, %s3518_s14  ;;  %v2003_v23 = vld [vmem:[%s3531_s0] sm:$0xff]  ;;  %v2004_v7 = vld [vmem:[%s3531_s0 + $0x8] sm:$0xff]  ;;  %s3340_s14 = scalar_lea.hbm %s3535_s13, %s2146_s2 }
 0x77c   : > { %1964 = vrot.lane.b32.xlu0 %v1912_v11, %s3519_s17  ;;  %s3534_s4 = sshll.u32 %s3532_s1, 4  ;;  %s2010_s19 = scalar_lea.sflag [#allocation5], %s3532_s1 }
 0x77d   : > { %s244_s15 = scalar_lea.vmem [#allocation9], %s3534_s4 }
 0x77e   : > { %1961 = vrot.lane.b32.xlu1 %v1915_v44, %s3520_s16  ;;  %s2023_s16 = sshll.u32 %s244_s15, 4  ;;  %s3342_s16 = int_to_ptr.vmem [resolvable:$true] %s2023_s16 }
 0x77f   : > { %s2618_s8 = scalar_lea.vmem %s3342_s16, 256  ;;  %p2625_p7 = scmp.lt.s32.totalorder %s3342_s16, %s2623_s25 }
 0x780   : > { %p2619_p11 = scmp.ne.s32.totalorder %s3342_s16, %s2618_s8  ;;  %p2626_p9 = scmp.lt.s32.totalorder %s2624_s21, %s2618_s8 }
 0x782   : > { %1967 = vrot.lane.b32.xlu1 %v1916_v46, %s3521_s26  ;;  %p2620_p2 = pnand %p2619_p11, %p3536_p0  ;;  %p2627_p12 = por %p2626_p9, %p2625_p7 }
 0x784   : > { %p2621_p3 = pneg %p2620_p2 }
 0x786   : > { %p2628_p1 = pnand %p2627_p12, %p2621_p3 }
 0x7d6   : > { %v1947_v48 = vpop.permute.xlu0 %1946 }
 0x7d8   : > { %v1919_v49 = vpop.permute.xlu1 %1918 }
 0x7d9   : > { %v1970_v47 = vsel %vm684_vm2, %v1890_v31, %v1919_v49 }
 0x7da   : > { %v1923_v51 = vpop.permute.xlu0 %1922 }
 0x7db   : > { %v1971_v45 = vsel %vm798_vm3, %v1970_v47, %v1923_v51 }
 0x7dc   : > { %v1950_v30 = vpop.permute.xlu1 %1949 }
 0x7de   : > { %v1931_v52 = vpop.permute.xlu0 %1930 }
 0x7e0   : > { %v1927_v53 = vpop.permute.xlu1 %1926 }
 0x7e1   : > { %v1972_v55 = vsel %vm800_vm4, %v1971_v45, %v1927_v53 }
 0x7e2   : > { %v1953_v54 = vpop.permute.xlu0 %1952  ;;  %v1973_v57 = vsel %vm802_vm5, %v1972_v55, %v1931_v52 }
 0x7e4   : > { %v1935_v0 = vpop.permute.xlu1 %1934 }
 0x7e5   : > { %v1974_v59 = vsel %vm804_vm6, %v1973_v57, %v1935_v0 }
 0x7e6   : > { %v1939_v56 = vpop.permute.xlu0 %1938 }
 0x7e7   : > { %v1975_v60 = vsel %vm806_vm7, %v1974_v59, %v1939_v56 }
 0x7e8   : > { %v1956_v58 = vpop.permute.xlu1 %1955 }
 0x7ea   : > { %v1959_v62 = vpop.permute.xlu0 %1958 }
 0x7ec   : > { %v1943_v61 = vpop.permute.xlu1 %1942 }
 0x7ed   : > { %v1976_v63 = vsel %vm808_vm8, %v1975_v60, %v1943_v61 }
 0x7ee   : > { %v1977_v1 = vsel %vm810_vm9, %v1976_v63, %v1947_v48  ;;  %v1965_v42 = vpop.permute.xlu0 %1964 }
 0x7ef   : > { %v1978_v2 = vsel %vm812_vm10, %v1977_v1, %v1950_v30 }
 0x7f0   : > { %v1979_v3 = vsel %vm814_vm11, %v1978_v2, %v1953_v54  ;;  %v1962_v4 = vpop.permute.xlu1 %1961 }
 0x7f1   : > { %v1980_v5 = vsel %vm816_vm12, %v1979_v3, %v1956_v58 }
 0x7f2   : > { %v1981_v41 = vsel %vm818_vm13, %v1980_v5, %v1959_v62 }
 0x7f3   : > { %v1982_v8 = vsel %vm820_vm14, %v1981_v41, %v1962_v4 }
 0x7f4   : > { %v1983_v9 = vsel %vm822_vm15, %v1982_v8, %v1965_v42  ;;  %v1968_v12 = vpop.permute.xlu1 %1967 }
 0x7f5   : > { %v1984_v13 = vsel %vm824_vm0, %v1983_v9, %v1968_v12 }
 0x7f6   : > { %v1988_v15 = vrot.slane %v1984_v13, %v3050_v34 }
 0x7f8   : > { %v1989_v18 = vmul.f32 %v1988_v15, %v3242_v20  ;;  %v1990_v19 = vmul.f32 %v1988_v15, %v3245_v21 }
 0x7fa   : > { %v1995_v16 = vmul.f32 %v1994_v14, %v1989_v18  ;;  %v1996_v22 = vmul.f32 %v1994_v14, %v1990_v19 }
 0x7fc   : > { %v2001_v24 = vadd.f32 %v2000_v17, %v1995_v16  ;;  %v2002_v25 = vadd.f32 %v2000_v17, %v1996_v22 }
 0x7fe   : > { %v2005_v34 = vadd.f32 %v2003_v23, %v2001_v24  ;;  %v2006_v50 = vadd.f32 %v2004_v7, %v2002_v25 }
 0x800   : > { %2007 = vst.msk [vmem:[%s244_s15] sm:$0xff] %vm251_vm1, %v2005_v34  ;;  %2008 = vst.msk [vmem:[%s244_s15 + $0x8] sm:$0xff] %vm251_vm1, %v2006_v50 }
 0x801   : > { %2631 = shalt.err (!%p2628_p1)
}
 0x802   : > { %s2632_s23 = scalar_lea.hbm %s3340_s14, 256  ;;  %s2636_s30 = scalar_lea.hbm %s3535_s13, 512 }
 0x803   : > { %p2633_p13 = scmp.ne.s32.totalorder %s3340_s14, %s2632_s23  ;;  %p2637_p4 = scmp.lt.u32.totalorder %s3340_s14, %s3535_s13 }
 0x804   : > { %p2638_p5 = scmp.lt.u32.totalorder %s2636_s30, %s2632_s23  ;;  %p2640_p11 = scmp.lt.u32.totalorder %s2632_s23, %s3340_s14 }
 0x805   : > { %p2634_p6 = pnand %p2633_p13, %p3536_p0 }
 0x806   : > { %p2639_p8 = por %p2638_p5, %p2637_p4 }
 0x807   : > { %p2635_p10 = pneg %p2634_p6 }
 0x808   : > { %p2641_p2 = por %p2640_p11, %p2639_p8 }
 0x80a   : > { %p2642_p3 = pnand %p2641_p2, %p2635_p10 }
 0x80c   : > { %2645 = shalt.err (!%p2642_p3)
}
 0x80d   : > { %s2729_s27 = smov 128  }
 0x80e   : > { %2435 = dma.vmem_to_hbm [thread:$0]  (%p3536_p0), %s3342_s16, 256, %s3340_s14, %s2010_s19, %s2729_s27, %s2729_s27, %s3509_s6  }
 0x80f PF: > { %s3537_s20 = sld [smem:[#allocation13_spill]]  ;;  %s3538_s29 = sld [smem:[#allocation17_spill]] }
 0x810   : > { %s3539_s5 = sld [smem:[#allocation16_spill]] }
 0x815   : > { %s2038_s9 = sand.u32 1, %s3537_s20   ;;  %p3540_p7 = scmp.ne.s32.totalorder %s3538_s29, 0 }
 0x816   : > { %p3541_p9 = scmp.ge.s32.totalorder %s3539_s5, 2  ;;  %s2039_s24 = scalar_lea.sflag [#allocation5], %s2038_s9 }
 0x818   : > { %p2449_p12 = pnand %p3541_p9, %p3540_p7 }
 0x81a   : > { %2671 = dma.done.wait (!%p2449_p12), %s2039_s24, 256  }
 0x81b   : > { %2673 = vsyncadd (!%p2449_p12), %s2039_s24, 4294967040  ;;  %s3542_s18 = sld [smem:[#allocation18_spill]]  ;;  %s3543_s15 = sld [smem:[#allocation14_spill]] }
 0x81c   : > { %s3544_s16 = sld [smem:[#allocation15_spill]]  ;;  %s3545_s17 = sld [smem:[#allocation20_spill]] }
 0x821   : > { %p18_p1 = scmp.ge.s32.totalorder %s3542_s18, 4  }
 0x823   :  { %20 = sbr.rel (!%p18_p1) target bundleno = 12 (0xc), region = 93 }
 0x82a   :  { %2044 = vsyncpa [#allocation4], 1 }
 0x82b   :  { %2046 = vsyncpa [#allocation4 + $0x1], 1 }
 0x82c   :  { %2047 = vsyncpa [#allocation7], 1 }
 0x82d   :  { %2048 = vsyncpa [#allocation5], 1 }
 0x82e   :  { %2050 = vsyncpa [#allocation5 + $0x1], 1 }

</bundles_post_ra>
